<compile_context>
chip_gen: v7x
topology: tpu7x:2x2x1
jax: 0.10.0
libtpu: 0.0.40
codegen_flags: <defaults>
</compile_context>

<pallas_src>
import functools

import jax
import jax.numpy as jnp
from jax.experimental import pallas as pl
from jax.experimental.pallas import tpu as pltpu


# ----------------------------------------------------------------------------
# Fused Pallas kernel
# ----------------------------------------------------------------------------

def _stgcn_fused_kernel(x_ref, w1_ref, b1_ref, lhat_ref, cw_ref, cb_ref,
                        w2_ref, b2_ref, g_ref, be_ref, o_ref, *,
                        k, K, n_nodes, batch, hidden, c_oh,
                        row_step, rows1, rows2, t1, t2, bn_count, eps):
    f32 = jnp.float32
    bf16 = jnp.bfloat16

    # ---- TemporalConv 1 (gated), tap-fused -----------------------------------
    # Rows are (t, b, n)-ordered: time tap tau == row shift by tau*row_step
    # (aligned; row_step = B*N is a multiple of the sublane tile).  The k taps
    # are lane-concatenated -> ONE matmul against the (k*Cin, 3*hidden) fused
    # weight (P | Q | R column blocks).  Single f32->bf16 cast of the LHS.
    x = x_ref[...]                                             # (T*B*N, Cin) f32
    xcat = jnp.concatenate(
        [x[tau * row_step: tau * row_step + rows1, :] for tau in range(k)],
        axis=-1).astype(bf16)                                  # (rows1, k*Cin)
    acc = jnp.dot(xcat, w1_ref[...], preferred_element_type=f32) + b1_ref[...]
    pg = acc[:, :hidden]
    qg = acc[:, hidden:2 * hidden]
    rg = acc[:, 2 * hidden:]
    h1 = jnp.maximum(pg * jax.nn.sigmoid(qg) + rg, 0.0)        # (rows1, hidden) f32

    # ---- ChebConv over every (b, t) slice at once + fused ReLU ---------------
    # Factorized: L_hat stays (N, N); h1 is viewed as (S, N, hidden) with a
    # layout-trivial reshape (N is a multiple of the sublane tile) and L_hat is
    # applied with a batched matmul per Chebyshev step.  Recurrence kept in f32
    # (precision: matches the PyTorch reference; FLOPs here are tiny).
    s_slices = t1 * batch
    h1_3d = h1.reshape(s_slices, n_nodes, hidden)
    out = jnp.dot(h1, cw_ref[0], preferred_element_type=f32)   # (rows1, hidden)
    if K > 1:
        lb = jnp.broadcast_to(lhat_ref[...],                   # hoisted once
                              (s_slices, n_nodes, n_nodes))
        tx_prev = h1_3d
        tx_cur = jnp.einsum('sij,sjh->sih', lb, h1_3d,
                            preferred_element_type=f32)
        out = out + jnp.dot(tx_cur.reshape(rows1, hidden), cw_ref[1],
                            preferred_element_type=f32)
        for kk in range(2, K):
            tx_next = (2.0 * jnp.einsum('sij,sjh->sih', lb, tx_cur,
                                        preferred_element_type=f32) - tx_prev)
            out = out + jnp.dot(tx_next.reshape(rows1, hidden), cw_ref[kk],
                                preferred_element_type=f32)
            tx_prev, tx_cur = tx_cur, tx_next
    h2 = jnp.maximum(out + cb_ref[...], 0.0)                   # (rows1, hidden)

    # ---- TemporalConv 2 (gated), tap-fused ------------------------------------
    hcat = jnp.concatenate(
        [h2[tau * row_step: tau * row_step + rows2, :] for tau in range(k)],
        axis=-1).astype(bf16)                                  # (rows2, k*hidden)
    acc2 = jnp.dot(hcat, w2_ref[...], preferred_element_type=f32) + b2_ref[...]
    pg2 = acc2[:, :c_oh]
    qg2 = acc2[:, c_oh:2 * c_oh]
    rg2 = acc2[:, 2 * c_oh:]
    h3 = jnp.maximum(pg2 * jax.nn.sigmoid(qg2) + rg2, 0.0)     # (rows2, c_oh)

    # ---- BatchNorm2d (channel = node), training-mode batch statistics --------
    # Per-node sums via a (T2*B, N, c_oh) view + sublane/lane reductions
    # (no selector matmuls).  Biased variance, matching PyTorch training mode.
    # TODO(synk): running-stat updates (module buffers) are not modeled.
    h3_3d = h3.reshape(t2 * batch, n_nodes, c_oh)
    s1 = jnp.sum(h3_3d, axis=0)                                # (N, c_oh)
    s2 = jnp.sum(h3_3d * h3_3d, axis=0)                        # (N, c_oh)
    inv_cnt = 1.0 / bn_count
    mean = jnp.sum(s1, axis=1, keepdims=True) * inv_cnt        # (N, 1)
    ex2 = jnp.sum(s2, axis=1, keepdims=True) * inv_cnt         # (N, 1)
    var = jnp.maximum(ex2 - mean * mean, 0.0)
    scale = g_ref[...] * jax.lax.rsqrt(var + eps)              # (N, 1)
    shift = be_ref[...] - mean * scale                         # (N, 1)

    # ---- last time step + per-node BN affine ----------------------------------
    # The reference keeps only t = T2-1; with (t, b, n)-major rows that is the
    # contiguous tail block, so only (B*N, c_oh) values are ever stored.
    y3 = h3[rows2 - row_step:, :].reshape(batch, n_nodes, c_oh)
    yb = y3 * scale.reshape(1, n_nodes, 1) + shift.reshape(1, n_nodes, 1)
    o_ref[...] = yb.reshape(row_step, c_oh)


# ----------------------------------------------------------------------------
# Wrapper (graph Laplacian / weight-fusion precompute + one pallas_call)
# ----------------------------------------------------------------------------

def cheb_scaled_laplacian(edge_index, edge_weight, num_nodes, lambda_max=2.0):
    """Dense L_hat = (2/lambda_max) * (I - D^-1/2 A D^-1/2) - I ('sym' norm).
    lambda_max=2.0 is the torch_geometric ChebConv default for 'sym'.
    Aggregation direction matches message passing (src -> dst), i.e. A^T."""
    src, dst = edge_index[0], edge_index[1]
    if edge_weight is None:
        edge_weight = jnp.ones(src.shape[0], dtype=jnp.float32)
    A = jnp.zeros((num_nodes, num_nodes), jnp.float32).at[src, dst].add(edge_weight)
    deg = jnp.sum(A, axis=1)
    dinv = jnp.where(deg > 0, 1.0 / jnp.sqrt(deg), 0.0)
    L = jnp.eye(num_nodes, dtype=jnp.float32) - dinv[:, None] * A.T * dinv[None, :]
    return (2.0 / lambda_max) * L - jnp.eye(num_nodes, dtype=jnp.float32)


def _fuse_temporal_weights(W1, W2, W3, b1, b2, b3):
    """(Cout, Cin, k) conv weights -> tap-fused (k*Cin, 3*Cout) bf16 weight
    (+ fused (1, 3*Cout) f32 bias), matching the P | Q | R gating order and the
    in-kernel lane-concat column order (tap-major, Cin-minor)."""
    def flat(W):
        cout = W.shape[0]
        return jnp.transpose(W, (2, 1, 0)).reshape(-1, cout)   # (k*Cin, Cout)
    wc = jnp.concatenate([flat(W1), flat(W2), flat(W3)], axis=-1)
    bc = jnp.concatenate([b1, b2, b3]).reshape(1, -1)
    return wc.astype(jnp.bfloat16), bc.astype(jnp.float32)


def stgcn_forward(X, edge_index, edge_weight, params, eps=1e-5):
    """Reproduces STGCN.forward. X: (B, num_nodes, input_dim, seq_len)."""
    B, N, Cin, T = X.shape
    W1a, W2a, W3a, b1a, b2a, b3a = params["tc1"]
    W1b, W2b, W3b, b1b, b2b, b3b = params["tc2"]
    hidden = W1a.shape[0]
    k = W1a.shape[2]
    c_oh = W1b.shape[0]
    K = params["cheb_w"].shape[0]
    T1 = T - (k - 1)
    T2 = T1 - (k - 1)
    row_step = B * N
    rows1 = T1 * row_step
    rows2 = T2 * row_step

    # X.permute(0,3,1,2) -> (B, T, N, Cin); then time-outermost (t, b, n) rows
    # so each temporal tap inside the kernel is an aligned row shift.
    x2d = jnp.transpose(X, (3, 0, 1, 2)).reshape(T * row_step, Cin)
    x2d = x2d.astype(jnp.float32)

    w1c, b1c = _fuse_temporal_weights(W1a, W2a, W3a, b1a, b2a, b3a)
    w2c, b2c = _fuse_temporal_weights(W1b, W2b, W3b, b1b, b2b, b3b)

    Lhat = cheb_scaled_laplacian(edge_index, edge_weight, N).astype(jnp.float32)
    cw = params["cheb_w"].astype(jnp.float32)                  # (K, hidden, hidden)
    cb = params["cheb_b"].reshape(1, hidden).astype(jnp.float32)

    gamma = params["bn_gamma"].reshape(N, 1).astype(jnp.float32)
    beta = params["bn_beta"].reshape(N, 1).astype(jnp.float32)

    kern = functools.partial(
        _stgcn_fused_kernel, k=k, K=K, n_nodes=N, batch=B, hidden=hidden,
        c_oh=c_oh, row_step=row_step, rows1=rows1, rows2=rows2, t1=T1, t2=T2,
        bn_count=float(B * T2 * c_oh), eps=eps)

    y = pl.pallas_call(
        kern,
        out_shape=jax.ShapeDtypeStruct((row_step, c_oh), jnp.float32),
        in_specs=[pl.BlockSpec(memory_space=pltpu.MemorySpace.VMEM)] * 10,
        out_specs=pl.BlockSpec(memory_space=pltpu.MemorySpace.VMEM),
        compiler_params=pltpu.CompilerParams(
            vmem_limit_bytes=32 * 1024 * 1024),
    )(x2d, w1c, b1c, Lhat, cw, cb, w2c, b2c, gamma, beta)

    # Reference tail: T.permute(3,0,1,2)[..., -1].reshape(seq_len, B, N, -1).
    # y is the last-time-step slice as (B*N, c_oh); its transpose is exactly
    # the contiguous (c_oh, B, N) tensor that PyTorch row-major reshapes.
    return jnp.transpose(y).reshape(T, B, N, -1)


# ----------------------------------------------------------------------------
# Main
# ----------------------------------------------------------------------------

if __name__ == "__main__":
    node_num, input_dim, hidden_units = 16, 4, 32
    output_dim, kernel_size, max_view = 2, 3, 3
    seq_len = 8
    horizon = seq_len          # makes the reference's final reshape well-defined
    batch = 2
    c_oh = output_dim * horizon

    key = jax.random.PRNGKey(0)
    ks = jax.random.split(key, 12)

    def rnd(k_, shape, scale=0.1):
        return scale * jax.random.normal(k_, shape, dtype=jnp.float32)

    params = {
        "tc1": (rnd(ks[0], (hidden_units, input_dim, kernel_size)),
                rnd(ks[1], (hidden_units, input_dim, kernel_size)),
                rnd(ks[2], (hidden_units, input_dim, kernel_size)),
                rnd(ks[3], (hidden_units,)),
                rnd(ks[4], (hidden_units,)),
                rnd(ks[5], (hidden_units,))),
        "cheb_w": rnd(ks[6], (max_view, hidden_units, hidden_units)),
        "cheb_b": rnd(ks[7], (hidden_units,)),
        "tc2": (rnd(ks[8], (c_oh, hidden_units, kernel_size)),
                rnd(ks[9], (c_oh, hidden_units, kernel_size)),
                rnd(ks[10], (c_oh, hidden_units, kernel_size)),
                jnp.zeros((c_oh,), jnp.float32),
                jnp.zeros((c_oh,), jnp.float32),
                jnp.zeros((c_oh,), jnp.float32)),
        "bn_gamma": jnp.ones((node_num,), jnp.float32),
        "bn_beta": jnp.zeros((node_num,), jnp.float32),
    }

    # input X: (B, num_nodes, input_dim, seq_len)  (see layout comment above)
    X = jax.random.normal(ks[11], (batch, node_num, input_dim, seq_len),
                          dtype=jnp.float32)

    # symmetric ring graph
    idx = jnp.arange(node_num, dtype=jnp.int32)
    src = jnp.concatenate([idx, (idx + 1) % node_num])
    dst = jnp.concatenate([(idx + 1) % node_num, idx])
    edge_index = jnp.stack([src, dst])                      # (2, 2*node_num)

    out = stgcn_forward(X, edge_index, None, params)
    out = jax.block_until_ready(out)

    assert out.shape == (seq_len, batch, node_num, output_dim), out.shape
    assert bool(jnp.all(jnp.isfinite(out)))
    print("KERNEL_OK")
</pallas_src>

<mosaic_0001>
module attributes {stable_mosaic.version = 11 : i64} {
  func.func @_stgcn_fused_kernel(%arg0: memref<256x4xf32, #tpu.memory_space<vmem>>, %arg1: memref<12x96xbf16, #tpu.memory_space<vmem>>, %arg2: memref<1x96xf32, #tpu.memory_space<vmem>>, %arg3: memref<16x16xf32, #tpu.memory_space<vmem>>, %arg4: memref<3x32x32xf32, #tpu.memory_space<vmem>>, %arg5: memref<1x32xf32, #tpu.memory_space<vmem>>, %arg6: memref<96x48xbf16, #tpu.memory_space<vmem>>, %arg7: memref<1x48xf32, #tpu.memory_space<vmem>>, %arg8: memref<16x1xf32, #tpu.memory_space<vmem>>, %arg9: memref<16x1xf32, #tpu.memory_space<vmem>>, %arg10: memref<32x16xf32, #tpu.memory_space<vmem>>) attributes {dimension_semantics = [], scalar_prefetch = 0 : i64, scratch_operands = 0 : i64, tpu.core_type = #tpu.core_type<tc>} {
    %c0 = arith.constant 0 : index
    %c0_0 = arith.constant 0 : index
    %0 = vector.load %arg0[%c0, %c0_0] : memref<256x4xf32, #tpu.memory_space<vmem>>, vector<256x4xf32>
    %1 = vector.extract_strided_slice %0 {offsets = [0, 0], sizes = [192, 4], strides = [1, 1]} : vector<256x4xf32> to vector<192x4xf32>
    %2 = vector.extract_strided_slice %0 {offsets = [32, 0], sizes = [192, 4], strides = [1, 1]} : vector<256x4xf32> to vector<192x4xf32>
    %3 = vector.extract_strided_slice %0 {offsets = [64, 0], sizes = [192, 4], strides = [1, 1]} : vector<256x4xf32> to vector<192x4xf32>
    %4 = tpu.concatenate %1, %2, %3 in 1 : vector<192x4xf32>, vector<192x4xf32>, vector<192x4xf32> -> vector<192x12xf32>
    %5 = arith.truncf %4 : vector<192x12xf32> to vector<192x12xbf16>
    %c0_1 = arith.constant 0 : index
    %c0_2 = arith.constant 0 : index
    %6 = vector.load %arg1[%c0_1, %c0_2] : memref<12x96xbf16, #tpu.memory_space<vmem>>, vector<12x96xbf16>
    %cst = arith.constant dense<0.000000e+00> : vector<192x96xf32>
    %7 = tpu.matmul %5, %6, %cst {dimension_numbers = #tpu.dot_dimension_numbers<[1], [0], [0], [1], [0, 0, 1, 1], [], []>} : vector<192x12xbf16>, vector<12x96xbf16>, vector<192x96xf32> -> vector<192x96xf32>
    %c0_3 = arith.constant 0 : index
    %c0_4 = arith.constant 0 : index
    %8 = vector.load %arg2[%c0_3, %c0_4] : memref<1x96xf32, #tpu.memory_space<vmem>>, vector<1x96xf32>
    %9 = vector.broadcast %8 : vector<1x96xf32> to vector<192x96xf32>
    %10 = arith.addf %7, %9 : vector<192x96xf32>
    %11 = vector.extract_strided_slice %10 {offsets = [0, 0], sizes = [192, 32], strides = [1, 1]} : vector<192x96xf32> to vector<192x32xf32>
    %12 = vector.extract_strided_slice %10 {offsets = [0, 32], sizes = [192, 32], strides = [1, 1]} : vector<192x96xf32> to vector<192x32xf32>
    %13 = vector.extract_strided_slice %10 {offsets = [0, 64], sizes = [192, 32], strides = [1, 1]} : vector<192x96xf32> to vector<192x32xf32>
    %14 = arith.negf %12 : vector<192x32xf32>
    %15 = math.exp %14 : vector<192x32xf32>
    %cst_5 = arith.constant 1.000000e+00 : f32
    %16 = vector.broadcast %cst_5 : f32 to vector<192x32xf32>
    %17 = arith.addf %16, %15 : vector<192x32xf32>
    %18 = arith.divf %16, %17 : vector<192x32xf32>
    %19 = arith.mulf %11, %18 : vector<192x32xf32>
    %20 = arith.addf %19, %13 : vector<192x32xf32>
    %cst_6 = arith.constant 0.000000e+00 : f32
    %21 = vector.broadcast %cst_6 : f32 to vector<192x32xf32>
    %22 = arith.maximumf %20, %21 : vector<192x32xf32>
    %23 = vector.shape_cast %22 : vector<192x32xf32> to vector<12x16x32xf32>
    %c0_7 = arith.constant 0 : index
    %c0_8 = arith.constant 0 : index
    %c0_9 = arith.constant 0 : index
    %24 = vector.load %arg4[%c0_7, %c0_8, %c0_9] : memref<3x32x32xf32, #tpu.memory_space<vmem>>, vector<1x32x32xf32>
    %25 = vector.shape_cast %24 : vector<1x32x32xf32> to vector<32x32xf32>
    %cst_10 = arith.constant dense<0.000000e+00> : vector<192x32xf32>
    %26 = tpu.matmul %22, %25, %cst_10 {dimension_numbers = #tpu.dot_dimension_numbers<[1], [0], [0], [1], [0, 0, 1, 1], [], []>} : vector<192x32xf32>, vector<32x32xf32>, vector<192x32xf32> -> vector<192x32xf32>
    %c0_11 = arith.constant 0 : index
    %c0_12 = arith.constant 0 : index
    %27 = vector.load %arg3[%c0_11, %c0_12] : memref<16x16xf32, #tpu.memory_space<vmem>>, vector<16x16xf32>
    %28 = vector.shape_cast %27 : vector<16x16xf32> to vector<1x16x16xf32>
    %29 = vector.broadcast %28 : vector<1x16x16xf32> to vector<12x16x16xf32>
    "tpu.trace_start"() <{level = 10 : i32, message = "sij,sjh->sih"}> : () -> ()
    %cst_13 = arith.constant dense<0.000000e+00> : vector<12x16x32xf32>
    %30 = tpu.matmul %29, %23, %cst_13 {dimension_numbers = #tpu.dot_dimension_numbers<[2], [1], [1], [2], [0, 0, 0, 1, 1, 2], [0], [0]>} : vector<12x16x16xf32>, vector<12x16x32xf32>, vector<12x16x32xf32> -> vector<12x16x32xf32>
    "tpu.trace_stop"() : () -> ()
    %31 = vector.shape_cast %30 : vector<12x16x32xf32> to vector<192x32xf32>
    %c1 = arith.constant 1 : index
    %c0_14 = arith.constant 0 : index
    %c0_15 = arith.constant 0 : index
    %32 = vector.load %arg4[%c1, %c0_14, %c0_15] : memref<3x32x32xf32, #tpu.memory_space<vmem>>, vector<1x32x32xf32>
    %33 = vector.shape_cast %32 : vector<1x32x32xf32> to vector<32x32xf32>
    %cst_16 = arith.constant dense<0.000000e+00> : vector<192x32xf32>
    %34 = tpu.matmul %31, %33, %cst_16 {dimension_numbers = #tpu.dot_dimension_numbers<[1], [0], [0], [1], [0, 0, 1, 1], [], []>} : vector<192x32xf32>, vector<32x32xf32>, vector<192x32xf32> -> vector<192x32xf32>
    %35 = arith.addf %26, %34 : vector<192x32xf32>
    "tpu.trace_start"() <{level = 10 : i32, message = "sij,sjh->sih"}> : () -> ()
    %cst_17 = arith.constant dense<0.000000e+00> : vector<12x16x32xf32>
    %36 = tpu.matmul %29, %30, %cst_17 {dimension_numbers = #tpu.dot_dimension_numbers<[2], [1], [1], [2], [0, 0, 0, 1, 1, 2], [0], [0]>} : vector<12x16x16xf32>, vector<12x16x32xf32>, vector<12x16x32xf32> -> vector<12x16x32xf32>
    "tpu.trace_stop"() : () -> ()
    %cst_18 = arith.constant 2.000000e+00 : f32
    %37 = vector.broadcast %cst_18 : f32 to vector<12x16x32xf32>
    %38 = arith.mulf %37, %36 : vector<12x16x32xf32>
    %39 = arith.subf %38, %23 : vector<12x16x32xf32>
    %40 = vector.shape_cast %39 : vector<12x16x32xf32> to vector<192x32xf32>
    %c2 = arith.constant 2 : index
    %c0_19 = arith.constant 0 : index
    %c0_20 = arith.constant 0 : index
    %41 = vector.load %arg4[%c2, %c0_19, %c0_20] : memref<3x32x32xf32, #tpu.memory_space<vmem>>, vector<1x32x32xf32>
    %42 = vector.shape_cast %41 : vector<1x32x32xf32> to vector<32x32xf32>
    %cst_21 = arith.constant dense<0.000000e+00> : vector<192x32xf32>
    %43 = tpu.matmul %40, %42, %cst_21 {dimension_numbers = #tpu.dot_dimension_numbers<[1], [0], [0], [1], [0, 0, 1, 1], [], []>} : vector<192x32xf32>, vector<32x32xf32>, vector<192x32xf32> -> vector<192x32xf32>
    %44 = arith.addf %35, %43 : vector<192x32xf32>
    %c0_22 = arith.constant 0 : index
    %c0_23 = arith.constant 0 : index
    %45 = vector.load %arg5[%c0_22, %c0_23] : memref<1x32xf32, #tpu.memory_space<vmem>>, vector<1x32xf32>
    %46 = vector.broadcast %45 : vector<1x32xf32> to vector<192x32xf32>
    %47 = arith.addf %44, %46 : vector<192x32xf32>
    %cst_24 = arith.constant 0.000000e+00 : f32
    %48 = vector.broadcast %cst_24 : f32 to vector<192x32xf32>
    %49 = arith.maximumf %47, %48 : vector<192x32xf32>
    %50 = vector.extract_strided_slice %49 {offsets = [0, 0], sizes = [128, 32], strides = [1, 1]} : vector<192x32xf32> to vector<128x32xf32>
    %51 = vector.extract_strided_slice %49 {offsets = [32, 0], sizes = [128, 32], strides = [1, 1]} : vector<192x32xf32> to vector<128x32xf32>
    %52 = vector.extract_strided_slice %49 {offsets = [64, 0], sizes = [128, 32], strides = [1, 1]} : vector<192x32xf32> to vector<128x32xf32>
    %53 = tpu.concatenate %50, %51, %52 in 1 : vector<128x32xf32>, vector<128x32xf32>, vector<128x32xf32> -> vector<128x96xf32>
    %54 = arith.truncf %53 : vector<128x96xf32> to vector<128x96xbf16>
    %c0_25 = arith.constant 0 : index
    %c0_26 = arith.constant 0 : index
    %55 = vector.load %arg6[%c0_25, %c0_26] : memref<96x48xbf16, #tpu.memory_space<vmem>>, vector<96x48xbf16>
    %cst_27 = arith.constant dense<0.000000e+00> : vector<128x48xf32>
    %56 = tpu.matmul %54, %55, %cst_27 {dimension_numbers = #tpu.dot_dimension_numbers<[1], [0], [0], [1], [0, 0, 1, 1], [], []>} : vector<128x96xbf16>, vector<96x48xbf16>, vector<128x48xf32> -> vector<128x48xf32>
    %c0_28 = arith.constant 0 : index
    %c0_29 = arith.constant 0 : index
    %57 = vector.load %arg7[%c0_28, %c0_29] : memref<1x48xf32, #tpu.memory_space<vmem>>, vector<1x48xf32>
    %58 = vector.broadcast %57 : vector<1x48xf32> to vector<128x48xf32>
    %59 = arith.addf %56, %58 : vector<128x48xf32>
    %60 = vector.extract_strided_slice %59 {offsets = [0, 0], sizes = [128, 16], strides = [1, 1]} : vector<128x48xf32> to vector<128x16xf32>
    %61 = vector.extract_strided_slice %59 {offsets = [0, 16], sizes = [128, 16], strides = [1, 1]} : vector<128x48xf32> to vector<128x16xf32>
    %62 = vector.extract_strided_slice %59 {offsets = [0, 32], sizes = [128, 16], strides = [1, 1]} : vector<128x48xf32> to vector<128x16xf32>
    %63 = arith.negf %61 : vector<128x16xf32>
    %64 = math.exp %63 : vector<128x16xf32>
    %cst_30 = arith.constant 1.000000e+00 : f32
    %65 = vector.broadcast %cst_30 : f32 to vector<128x16xf32>
    %66 = arith.addf %65, %64 : vector<128x16xf32>
    %67 = arith.divf %65, %66 : vector<128x16xf32>
    %68 = arith.mulf %60, %67 : vector<128x16xf32>
    %69 = arith.addf %68, %62 : vector<128x16xf32>
    %cst_31 = arith.constant 0.000000e+00 : f32
    %70 = vector.broadcast %cst_31 : f32 to vector<128x16xf32>
    %71 = arith.maximumf %69, %70 : vector<128x16xf32>
    %72 = vector.shape_cast %71 : vector<128x16xf32> to vector<8x16x16xf32>
    %cst_32 = arith.constant dense<0.000000e+00> : vector<16x16xf32>
    %73 = vector.multi_reduction <add>, %72, %cst_32 [0] : vector<8x16x16xf32> to vector<16x16xf32>
    %74 = arith.mulf %72, %72 : vector<8x16x16xf32>
    %cst_33 = arith.constant dense<0.000000e+00> : vector<16x16xf32>
    %75 = vector.multi_reduction <add>, %74, %cst_33 [0] : vector<8x16x16xf32> to vector<16x16xf32>
    %cst_34 = arith.constant dense<0.000000e+00> : vector<16xf32>
    %76 = vector.multi_reduction <add>, %73, %cst_34 [1] : vector<16x16xf32> to vector<16xf32>
    %77 = vector.shape_cast %76 : vector<16xf32> to vector<16x1xf32>
    %cst_35 = arith.constant 7.812500e-03 : f32
    %78 = vector.broadcast %cst_35 : f32 to vector<16x1xf32>
    %79 = arith.mulf %77, %78 : vector<16x1xf32>
    %cst_36 = arith.constant dense<0.000000e+00> : vector<16xf32>
    %80 = vector.multi_reduction <add>, %75, %cst_36 [1] : vector<16x16xf32> to vector<16xf32>
    %81 = vector.shape_cast %80 : vector<16xf32> to vector<16x1xf32>
    %cst_37 = arith.constant 7.812500e-03 : f32
    %82 = vector.broadcast %cst_37 : f32 to vector<16x1xf32>
    %83 = arith.mulf %81, %82 : vector<16x1xf32>
    %84 = arith.mulf %79, %79 : vector<16x1xf32>
    %85 = arith.subf %83, %84 : vector<16x1xf32>
    %cst_38 = arith.constant 0.000000e+00 : f32
    %86 = vector.broadcast %cst_38 : f32 to vector<16x1xf32>
    %87 = arith.maximumf %85, %86 : vector<16x1xf32>
    %c0_39 = arith.constant 0 : index
    %c0_40 = arith.constant 0 : index
    %88 = vector.load %arg8[%c0_39, %c0_40] : memref<16x1xf32, #tpu.memory_space<vmem>>, vector<16x1xf32>
    %cst_41 = arith.constant 9.99999974E-6 : f32
    %89 = vector.broadcast %cst_41 : f32 to vector<16x1xf32>
    %90 = arith.addf %87, %89 : vector<16x1xf32>
    %91 = math.rsqrt %90 : vector<16x1xf32>
    %92 = arith.mulf %88, %91 : vector<16x1xf32>
    %c0_42 = arith.constant 0 : index
    %c0_43 = arith.constant 0 : index
    %93 = vector.load %arg9[%c0_42, %c0_43] : memref<16x1xf32, #tpu.memory_space<vmem>>, vector<16x1xf32>
    %94 = arith.mulf %79, %92 : vector<16x1xf32>
    %95 = arith.subf %93, %94 : vector<16x1xf32>
    %96 = vector.extract_strided_slice %71 {offsets = [96, 0], sizes = [32, 16], strides = [1, 1]} : vector<128x16xf32> to vector<32x16xf32>
    %97 = vector.shape_cast %96 : vector<32x16xf32> to vector<2x16x16xf32>
    %98 = vector.shape_cast %92 : vector<16x1xf32> to vector<1x16x1xf32>
    %99 = vector.broadcast %98 : vector<1x16x1xf32> to vector<2x16x16xf32>
    %100 = arith.mulf %97, %99 : vector<2x16x16xf32>
    %101 = vector.shape_cast %95 : vector<16x1xf32> to vector<1x16x1xf32>
    %102 = vector.broadcast %101 : vector<1x16x1xf32> to vector<2x16x16xf32>
    %103 = arith.addf %100, %102 : vector<2x16x16xf32>
    %104 = vector.shape_cast %103 : vector<2x16x16xf32> to vector<32x16xf32>
    %c0_44 = arith.constant 0 : index
    %c0_45 = arith.constant 0 : index
    %105 = vector.load %arg10[%c0_44, %c0_45] : memref<32x16xf32, #tpu.memory_space<vmem>>, vector<32x16xf32>
    tpu.vector_store %arg10[%c0_44, %c0_45], %104 {strides = array<i32>} : memref<32x16xf32, #tpu.memory_space<vmem>>, vector<32x16xf32>,
    return
  }
}

</mosaic_0001>

<bundles_post_ra>
// kernel: tpu_custom_call.1
= control target key start
LH: loop header
LB: loop body
LE: loop exit
PB: predicated region body
PF: predicated region fallthrough
CT: control target
= control target key end

     0   :  { %s5682_s29 = smov 8   ;;  %s5683_s30 = smov 4   ;;  %vm353_vm0 = vcmask 1045504   ;;  %vm240_vm1 = vcmask 31744   ;;  %vm265_vm2 = vcmask 64512   ;;  %vm316_vm3 = vcmask 97280   ;;  %s7048_s0 = inlined_call_operand.vmem [shape: f32[256,4], index: 0, kind: input, shape index: {}]   ;;  %s7049_s1 = inlined_call_operand.vmem [shape: bf16[12,96], index: 1, kind: input, shape index: {}]   ;;  %s7050_s2 = inlined_call_operand.vmem [shape: f32[1,96], index: 2, kind: input, shape index: {}]   ;;  %s7051_s3 = inlined_call_operand.vmem [shape: f32[16,16], index: 3, kind: input, shape index: {}]   ;;  %s7052_s4 = inlined_call_operand.vmem [shape: f32[3,32,32], index: 4, kind: input, shape index: {}]   ;;  %s7053_s6 = inlined_call_operand.vmem [shape: bf16[96,48], index: 6, kind: input, shape index: {}]   ;;  %s7054_s5 = inlined_call_operand.vmem [shape: f32[1,32], index: 5, kind: input, shape index: {}]   ;;  %s7055_s7 = inlined_call_operand.vmem [shape: f32[1,48], index: 7, kind: input, shape index: {}]   ;;  %s7056_s8 = inlined_call_operand.vmem [shape: f32[16,1], index: 8, kind: input, shape index: {}]   ;;  %s7057_s9 = inlined_call_operand.vmem [shape: f32[16,1], index: 9, kind: input, shape index: {}]   ;;  %s7058_s10 = inlined_call_operand.vmem [shape: f32[32,16], index: 10, kind: output, shape index: {}]  }
   0x1   :  { %v5747_v0 = vld [vmem:[%s7048_s0 + $0x40] sm:$0xff]  ;;  %v5752_v1 = vld [vmem:[%s7048_s0 + $0x48] sm:$0xff]  ;;  %v5769_v5 = vld [vmem:[%s7048_s0 + $0x50] sm:$0xff]  ;;  %s5684_s22 = smov 64   ;;  %vm900_vm4 = vcmask 130048   ;;  %vm1812_vm5 = vcmask 261120  }
   0x2   :  { %v5757_v2 = vld [vmem:[%s7048_s0 + $0x20] sm:$0xff]  ;;  %v5319_v3 = vpack.i.bf16 %v5752_v1, %v5747_v0  ;;  %v5764_v4 = vld [vmem:[%s7048_s0 + $0x28] sm:$0xff]  ;;  %v5774_v6 = vld [vmem:[%s7048_s0 + $0x58] sm:$0xff]  ;;  %vm3748_vm6 = vcmask 523264   ;;  %vm3828_vm7 = vcmask 785408  }
   0x3   :  { %v5309_v7 = vpack.i.bf16 %v5764_v4, %v5757_v2  ;;  %v5781_v8 = vld [vmem:[%s7048_s0 + $0x30] sm:$0xff]  ;;  %v5786_v9 = vld [vmem:[%s7048_s0 + $0x38] sm:$0xff]  ;;  %v5324_v10 = vpack.i.bf16 %v5774_v6, %v5769_v5  ;;  %v5809_v14 = vld [vmem:[%s7048_s0 + $0x60] sm:$0xff] }
   0x4   :  { %5320 = vrot.lane.b32.xlu1 %v5319_v3, %s5682_s29  ;;  %v5314_v11 = vpack.i.bf16 %v5786_v9, %v5781_v8  ;;  %v5799_v12 = vld [vmem:[%s7048_s0 + $0x70] sm:$0xff]  ;;  %v5804_v13 = vld [vmem:[%s7048_s0 + $0x78] sm:$0xff]  ;;  %v5814_v15 = vld [vmem:[%s7048_s0 + $0x68] sm:$0xff] }
   0x5   :  { %5310 = vrot.lane.b32.xlu0 %v5309_v7, %s5683_s30  ;;  %v5511_v16 = vld [vmem:[%s7049_s1] sm:$0x3f]   ;;  %v5344_v17 = vpack.i.bf16 %v5804_v13, %v5799_v12  ;;  %v5339_v18 = vpack.i.bf16 %v5814_v15, %v5809_v14  ;;  %v5830_v20 = vld [vmem:[%s7048_s0 + $0x90] sm:$0xff]  ;;  %v5835_v21 = vld [vmem:[%s7048_s0 + $0x98] sm:$0xff] }
   0x6   :  { %5301 = vmatprep.subr.msk.bf16.mxu0 %vm353_vm0, %v5511_v16  ;;  %v355_v19 = vsel %vm353_vm0, %v5511_v16, 0  ;;  %v5840_v22 = vld [vmem:[%s7048_s0 + $0x80] sm:$0xff]  ;;  %v5845_v23 = vld [vmem:[%s7048_s0 + $0x88] sm:$0xff]  ;;  %v5364_v24 = vpack.i.bf16 %v5835_v21, %v5830_v20  ;;  %v5858_v26 = vld [vmem:[%s7048_s0 + $0xb0] sm:$0xff] }
   0x7   :  { %4776 = vmatpush3.bf16.msra.mxu0 %v355_v19  ;;  %v5359_v25 = vpack.i.bf16 %v5845_v23, %v5840_v22  ;;  %v5863_v27 = vld [vmem:[%s7048_s0 + $0xb8] sm:$0xff]  ;;  %v5868_v28 = vld [vmem:[%s7048_s0 + $0xa0] sm:$0xff]  ;;  %v5873_v29 = vld [vmem:[%s7048_s0 + $0xa8] sm:$0xff] }
   0x8   :  { %5325 = vrot.lane.b32.xlu1 %v5324_v10, %s5682_s29  ;;  %v5384_v30 = vpack.i.bf16 %v5863_v27, %v5858_v26  ;;  %v5379_v31 = vpack.i.bf16 %v5873_v29, %v5868_v28  ;;  %v62_v32 = vld [vmem:[%s7048_s0 + $0xd0] sm:$0xff]  ;;  %v63_v33 = vld [vmem:[%s7048_s0 + $0xd8] sm:$0xff]  ;;  %v60_v34 = vld [vmem:[%s7048_s0 + $0xc0] sm:$0xff] }
   0x9   :  { %5315 = vrot.lane.b32.xlu0 %v5314_v11, %s5683_s30  ;;  %v61_v35 = vld [vmem:[%s7048_s0 + $0xc8] sm:$0xff]  ;;  %v5404_v36 = vpack.i.bf16 %v63_v33, %v62_v32  ;;  %v66_v38 = vld [vmem:[%s7048_s0 + $0xf0] sm:$0xff]  ;;  %v67_v39 = vld [vmem:[%s7048_s0 + $0xf8] sm:$0xff] }
   0xa   :  { %v5399_v37 = vpack.i.bf16 %v61_v35, %v60_v34  ;;  %v64_v40 = vld [vmem:[%s7048_s0 + $0xe0] sm:$0xff]  ;;  %v65_v41 = vld [vmem:[%s7048_s0 + $0xe8] sm:$0xff]  ;;  %v5424_v42 = vpack.i.bf16 %v67_v39, %v66_v38  ;;  %v38_v58 = vld [vmem:[%s7048_s0 + $0x10] sm:$0xff] }
   0xb   :  { %v5419_v43 = vpack.i.bf16 %v65_v41, %v64_v40  ;;  %v36_v48 = vld [vmem:[%s7048_s0] sm:$0xff]  ;;  %v37_v49 = vld [vmem:[%s7048_s0 + $0x8] sm:$0xff]  ;;  %v39_v59 = vld [vmem:[%s7048_s0 + $0x18] sm:$0xff] }
   0xc   :  { %5335 = vrot.lane.b32.xlu1 %v5324_v10, %s5683_s30 }
   0xd   :  { %5330 = vrot.lane.b32.xlu0 %v5319_v3, %s5683_s30 }
  0x10   :  { %5345 = vrot.lane.b32.xlu1 %v5344_v17, %s5682_s29 }
  0x11   :  { %5340 = vrot.lane.b32.xlu0 %v5339_v18, %s5682_s29 }
  0x14   :  { %5355 = vrot.lane.b32.xlu1 %v5344_v17, %s5683_s30 }
  0x15   :  { %5350 = vrot.lane.b32.xlu0 %v5339_v18, %s5683_s30 }
  0x18   :  { %5365 = vrot.lane.b32.xlu1 %v5364_v24, %s5682_s29 }
  0x19   :  { %5360 = vrot.lane.b32.xlu0 %v5359_v25, %s5682_s29 }
  0x1c   :  { %5375 = vrot.lane.b32.xlu1 %v5364_v24, %s5683_s30 }
  0x1d   :  { %5370 = vrot.lane.b32.xlu0 %v5359_v25, %s5683_s30 }
  0x20   :  { %5385 = vrot.lane.b32.xlu1 %v5384_v30, %s5682_s29 }
  0x21   :  { %5380 = vrot.lane.b32.xlu0 %v5379_v31, %s5682_s29 }
  0x24   :  { %5395 = vrot.lane.b32.xlu1 %v5384_v30, %s5683_s30 }
  0x25   :  { %5390 = vrot.lane.b32.xlu0 %v5379_v31, %s5683_s30 }
  0x28   :  { %5405 = vrot.lane.b32.xlu1 %v5404_v36, %s5682_s29 }
  0x29   :  { %5400 = vrot.lane.b32.xlu0 %v5399_v37, %s5682_s29 }
  0x2c   :  { %5415 = vrot.lane.b32.xlu1 %v5404_v36, %s5683_s30 }
  0x2d   :  { %5410 = vrot.lane.b32.xlu0 %v5399_v37, %s5683_s30 }
  0x30   :  { %5425 = vrot.lane.b32.xlu1 %v5424_v42, %s5682_s29 }
  0x31   :  { %5420 = vrot.lane.b32.xlu0 %v5419_v43, %s5682_s29  ;;  %s5686_s29 = smov 32  }
  0x76   :  { %v5321_v44 = vpop.permute.xlu1 %5320 }
  0x77   :  { %v5323_v45 = vunpack.i.h.bf16 %v5321_v44  ;;  %v5322_v46 = vunpack.i.l.bf16 %v5321_v44  ;;  %v5311_v47 = vpop.permute.xlu0 %5310 }
  0x78   :  { %v5313_v50 = vunpack.i.h.bf16 %v5311_v47  ;;  %v5312_v51 = vunpack.i.l.bf16 %v5311_v47 }
  0x7a   :  { %v5326_v52 = vpop.permute.xlu1 %5325  ;;  %v241_v53 = vsel %vm240_vm1, %v36_v48, %v5312_v51  ;;  %v242_v54 = vsel %vm240_vm1, %v37_v49, %v5313_v50 }
  0x7b   :  { %v5328_v55 = vunpack.i.h.bf16 %v5326_v52  ;;  %v5327_v56 = vunpack.i.l.bf16 %v5326_v52  ;;  %v5316_v57 = vpop.permute.xlu0 %5315  ;;  %v266_v60 = vsel %vm265_vm2, %v241_v53, %v5322_v46  ;;  %v267_v61 = vsel %vm265_vm2, %v242_v54, %v5323_v45 }
  0x7c   :  { %v5318_v62 = vunpack.i.h.bf16 %v5316_v57  ;;  %v5317_v63 = vunpack.i.l.bf16 %v5316_v57  ;;  %v290_v3 = vpack.c.bf16 %v267_v61, %v266_v60 }
  0x7e   :  { %v243_v7 = vsel %vm240_vm1, %v38_v58, %v5317_v63  ;;  %v244_v10 = vsel %vm240_vm1, %v39_v59, %v5318_v62  ;;  %4777 = vmatprep.mubr.msk.bf16.mxu0 %vm316_vm3, %v290_v3  ;;  %v5336_v11 = vpop.permute.xlu1 %5335 }
  0x7f   :  { %v5331_v16 = vpop.permute.xlu0 %5330  ;;  %v268_v17 = vsel %vm265_vm2, %v243_v7, %v5327_v56  ;;  %v269_v18 = vsel %vm265_vm2, %v244_v10, %v5328_v55  ;;  %v5338_v19 = vunpack.i.h.bf16 %v5336_v11  ;;  %v5337_v24 = vunpack.i.l.bf16 %v5336_v11 }
  0x80   :  { %v291_v25 = vpack.c.bf16 %v269_v18, %v268_v17  ;;  %v5333_v30 = vunpack.i.h.bf16 %v5331_v16  ;;  %v5332_v31 = vunpack.i.l.bf16 %v5331_v16 }
  0x81   :  { %v247_v36 = vsel %vm240_vm1, %v5781_v8, %v5337_v24  ;;  %v248_v37 = vsel %vm240_vm1, %v5786_v9, %v5338_v19 }
  0x82   :  { %4778 = vmatmul.mubr.msk.bf16.vlgmr.msra.gmra.mrb[0].mxu0 %vm316_vm3, %v291_v25  ;;  %v5346_v32 = vpop.permute.xlu1 %5345  ;;  %v246_v40 = vsel %vm240_vm1, %v5764_v4, %v5333_v30  ;;  %v245_v41 = vsel %vm240_vm1, %v5757_v2, %v5332_v31 }
  0x83   :  { %v5348_v33 = vunpack.i.h.bf16 %v5346_v32  ;;  %v5347_v34 = vunpack.i.l.bf16 %v5346_v32  ;;  %v5341_v35 = vpop.permute.xlu0 %5340 }
  0x84   :  { %v5343_v38 = vunpack.i.h.bf16 %v5341_v35  ;;  %v5342_v39 = vunpack.i.l.bf16 %v5341_v35 }
  0x85   :  { %v272_v42 = vsel %vm265_vm2, %v247_v36, %v5347_v34  ;;  %v273_v43 = vsel %vm265_vm2, %v248_v37, %v5348_v33 }
  0x86   :  { %v270_v44 = vsel %vm265_vm2, %v245_v41, %v5342_v39  ;;  %v271_v45 = vsel %vm265_vm2, %v246_v40, %v5343_v38  ;;  %v5356_v8 = vpop.permute.xlu1 %5355  ;;  %v293_v46 = vpack.c.bf16 %v273_v43, %v272_v42 }
  0x87   :  { %v5351_v47 = vpop.permute.xlu0 %5350  ;;  %v292_v9 = vpack.c.bf16 %v271_v45, %v270_v44  ;;  %v5358_v48 = vunpack.i.h.bf16 %v5356_v8  ;;  %v5357_v49 = vunpack.i.l.bf16 %v5356_v8 }
  0x88   :  { %v5353_v50 = vunpack.i.h.bf16 %v5351_v47  ;;  %v5352_v51 = vunpack.i.l.bf16 %v5351_v47 }
  0x89   :  { %4781 = vmatprep.mubr.msk.bf16.mxu0 %vm316_vm3, %v292_v9  ;;  %v252_v54 = vsel %vm240_vm1, %v5774_v6, %v5358_v48  ;;  %v251_v55 = vsel %vm240_vm1, %v5769_v5, %v5357_v49 }
  0x8a   :  { %4782 = vmatmul.mubr.msk.bf16.gmra.mrb[4].mxu0 %vm316_vm3, %v293_v46  ;;  %v5366_v2 = vpop.permute.xlu1 %5365  ;;  %v250_v58 = vsel %vm240_vm1, %v5752_v1, %v5353_v50  ;;  %v249_v59 = vsel %vm240_vm1, %v5747_v0, %v5352_v51 }
  0x8b   :  { %v5368_v4 = vunpack.i.h.bf16 %v5366_v2  ;;  %v5367_v52 = vunpack.i.l.bf16 %v5366_v2  ;;  %v5361_v53 = vpop.permute.xlu0 %5360 }
  0x8c   :  { %v5363_v56 = vunpack.i.h.bf16 %v5361_v53  ;;  %v5362_v57 = vunpack.i.l.bf16 %v5361_v53 }
  0x8d   :  { %v276_v60 = vsel %vm265_vm2, %v251_v55, %v5367_v52  ;;  %v277_v61 = vsel %vm265_vm2, %v252_v54, %v5368_v4 }
  0x8e   :  { %v274_v62 = vsel %vm265_vm2, %v249_v59, %v5362_v57  ;;  %v275_v63 = vsel %vm265_vm2, %v250_v58, %v5363_v56  ;;  %v5376_v6 = vpop.permute.xlu1 %5375  ;;  %v295_v3 = vpack.c.bf16 %v277_v61, %v276_v60 }
  0x8f   :  { %v5371_v7 = vpop.permute.xlu0 %5370  ;;  %v294_v5 = vpack.c.bf16 %v275_v63, %v274_v62  ;;  %v5378_v10 = vunpack.i.h.bf16 %v5376_v6  ;;  %v5377_v11 = vunpack.i.l.bf16 %v5376_v6 }
  0x90   :  { %v5373_v16 = vunpack.i.h.bf16 %v5371_v7  ;;  %v5372_v17 = vunpack.i.l.bf16 %v5371_v7 }
  0x91   :  { %4785 = vmatprep.mubr.msk.bf16.mxu0 %vm316_vm3, %v294_v5  ;;  %v256_v24 = vsel %vm240_vm1, %v5804_v13, %v5378_v10  ;;  %v255_v25 = vsel %vm240_vm1, %v5799_v12, %v5377_v11 }
  0x92   :  { %4786 = vmatmul.mubr.msk.bf16.gmra.mrb[8].mxu0 %vm316_vm3, %v295_v3  ;;  %v5386_v0 = vpop.permute.xlu1 %5385  ;;  %v254_v32 = vsel %vm240_vm1, %v5814_v15, %v5373_v16  ;;  %v253_v33 = vsel %vm240_vm1, %v5809_v14, %v5372_v17 }
  0x93   :  { %v5388_v1 = vunpack.i.h.bf16 %v5386_v0  ;;  %v5387_v18 = vunpack.i.l.bf16 %v5386_v0  ;;  %v5381_v19 = vpop.permute.xlu0 %5380 }
  0x94   :  { %v5383_v30 = vunpack.i.h.bf16 %v5381_v19  ;;  %v5382_v31 = vunpack.i.l.bf16 %v5381_v19 }
  0x95   :  { %v280_v34 = vsel %vm265_vm2, %v255_v25, %v5387_v18  ;;  %v281_v35 = vsel %vm265_vm2, %v256_v24, %v5388_v1 }
  0x96   :  { %v278_v36 = vsel %vm265_vm2, %v253_v33, %v5382_v31  ;;  %v279_v37 = vsel %vm265_vm2, %v254_v32, %v5383_v30  ;;  %v5396_v13 = vpop.permute.xlu1 %5395  ;;  %v297_v38 = vpack.c.bf16 %v281_v35, %v280_v34 }
  0x97   :  { %v5391_v39 = vpop.permute.xlu0 %5390  ;;  %v296_v12 = vpack.c.bf16 %v279_v37, %v278_v36  ;;  %v5398_v40 = vunpack.i.h.bf16 %v5396_v13  ;;  %v5397_v41 = vunpack.i.l.bf16 %v5396_v13 }
  0x98   :  { %v5393_v42 = vunpack.i.h.bf16 %v5391_v39  ;;  %v5392_v43 = vunpack.i.l.bf16 %v5391_v39 }
  0x99   :  { %4789 = vmatprep.mubr.msk.bf16.mxu0 %vm316_vm3, %v296_v12  ;;  %v260_v14 = vsel %vm240_vm1, %v5835_v21, %v5398_v40  ;;  %v259_v15 = vsel %vm240_vm1, %v5830_v20, %v5397_v41 }
  0x9a   :  { %4790 = vmatmul.mubr.msk.bf16.gmra.mrb[12].mxu0 %vm316_vm3, %v297_v38  ;;  %v5406_v44 = vpop.permute.xlu1 %5405  ;;  %v258_v45 = vsel %vm240_vm1, %v5845_v23, %v5393_v42  ;;  %v257_v8 = vsel %vm240_vm1, %v5840_v22, %v5392_v43 }
  0x9b   :  { %v5401_v46 = vpop.permute.xlu0 %5400  ;;  %v5408_v47 = vunpack.i.h.bf16 %v5406_v44  ;;  %v5407_v9 = vunpack.i.l.bf16 %v5406_v44 }
  0x9c   :  { %v5403_v48 = vunpack.i.h.bf16 %v5401_v46  ;;  %v5402_v49 = vunpack.i.l.bf16 %v5401_v46 }
  0x9d   :  { %v284_v50 = vsel %vm265_vm2, %v259_v15, %v5407_v9  ;;  %v285_v21 = vsel %vm265_vm2, %v260_v14, %v5408_v47 }
  0x9e   :  { %v282_v20 = vsel %vm265_vm2, %v257_v8, %v5402_v49  ;;  %v283_v51 = vsel %vm265_vm2, %v258_v45, %v5403_v48  ;;  %v299_v2 = vpack.c.bf16 %v285_v21, %v284_v50  ;;  %v5416_v4 = vpop.permute.xlu1 %5415 }
  0x9f   :  { %v298_v52 = vpack.c.bf16 %v283_v51, %v282_v20  ;;  %v5411_v23 = vpop.permute.xlu0 %5410  ;;  %v5418_v53 = vunpack.i.h.bf16 %v5416_v4  ;;  %v5417_v54 = vunpack.i.l.bf16 %v5416_v4 }
  0xa0   :  { %v5413_v22 = vunpack.i.h.bf16 %v5411_v23  ;;  %v5412_v55 = vunpack.i.l.bf16 %v5411_v23 }
  0xa1   :  { %4793 = vmatprep.mubr.msk.bf16.mxu0 %vm316_vm3, %v298_v52  ;;  %v264_v56 = vsel %vm240_vm1, %v5863_v27, %v5418_v53  ;;  %v263_v57 = vsel %vm240_vm1, %v5858_v26, %v5417_v54 }
  0xa2   :  { %4794 = vmatmul.mubr.msk.bf16.gmra.mrb[16].mxu0 %vm316_vm3, %v299_v2  ;;  %v5426_v58 = vpop.permute.xlu1 %5425  ;;  %v262_v59 = vsel %vm240_vm1, %v5873_v29, %v5413_v22  ;;  %v261_v60 = vsel %vm240_vm1, %v5868_v28, %v5412_v55  ;;  %v6010_v28 = vld [vmem:[%s7050_s2] ss:$0 sm:$0xff]  ;;  %s5685_s2 = smov 96  }
  0xa3   :  { %v5421_v61 = vpop.permute.xlu0 %5420  ;;  %v5428_v62 = vunpack.i.h.bf16 %v5426_v58  ;;  %v5427_v63 = vunpack.i.l.bf16 %v5426_v58 }
  0xa4   :  { %v5423_v6 = vunpack.i.h.bf16 %v5421_v61  ;;  %v5422_v3 = vunpack.i.l.bf16 %v5421_v61 }
  0xa5   :  { %v288_v7 = vsel %vm265_vm2, %v263_v57, %v5427_v63  ;;  %v289_v5 = vsel %vm265_vm2, %v264_v56, %v5428_v62 }
  0xa6   :  { %v286_v27 = vsel %vm265_vm2, %v261_v60, %v5422_v3  ;;  %v287_v26 = vsel %vm265_vm2, %v262_v59, %v5423_v6  ;;  %v301_v10 = vpack.c.bf16 %v289_v5, %v288_v7 }
  0xa7   :  { %v300_v11 = vpack.c.bf16 %v287_v26, %v286_v27 }
  0xa9   :  { %4797 = vmatprep.mubr.msk.bf16.mxu0 %vm316_vm3, %v300_v11 }
  0xaa   :  { %4798 = vmatmul.mubr.msk.bf16.gmra.mrb[20].mxu0 %vm316_vm3, %v301_v10 }
 0x155   :  { %v4779_v29 = vpop.f32.mrb[0].mxu0 }
 0x156   :  { %v6013_v16 = vadd.f32 %v4779_v29, %v6010_v28  ;;  %v391_v17 = vpop.f32.mrb[1].mxu0 }
 0x157   :  { %v4780_v0 = vpop.f32.mrb[2].mxu0  ;;  %v6017_v18 = vadd.f32 %v6010_v28, %v391_v17 }
 0x158   :  { %v4386_v1 = vmul.f32 -1.442695, %v6013_v16  ;;  %v6020_v19 = vadd.f32 %v4780_v0, %v6010_v28  ;;  %778 = vrot.lane.b32.xlu0 %v6013_v16, %s5684_s22  ;;  %v394_v24 = vpop.f32.mrb[3].mxu0 }
 0x159   :  { %v6026_v30 = vadd.f32 %v6010_v28, %v394_v24  ;;  %v4384_v31 = vmul.f32 -1.442695, %v6017_v18 }
 0x15a   :  { %v4387_v25 = vmul.f32 -1.442695, %v6020_v19  ;;  %780 = vrot.lane.b32.xlu1 %v6020_v19, %s5684_s22  ;;  %5518 = vpow2.f32 %v4386_v1 }
 0x15b   :  { %v4385_v33 = vmul.f32 -1.442695, %v6026_v30 }
 0x15c   :  { %774 = vrot.lane.b32.xlu0 %v6017_v18, %s5684_s22  ;;  %5520 = vpow2.f32 %v4387_v25 }
 0x15d   :  { %v4783_v32 = vpop.f32.mrb[4].mxu0  ;;  %5522 = vpow2.f32 %v4384_v31  ;;  %v6116_v31 = vld [vmem:[%s7051_s3] sm:$0xff] }
 0x15e   :  { %v6035_v34 = vadd.f32 %v4783_v32, %v6010_v28  ;;  %v407_v35 = vpop.f32.mrb[5].mxu0  ;;  %776 = vrot.lane.b32.xlu1 %v6026_v30, %s5684_s22  ;;  %5524 = vpow2.f32 %v4385_v33  ;;  %4805 = vmatprep.mubr.msk.f32.mxu1 %vm900_vm4, %v6116_v31 }
 0x15f   :  { %v4784_v36 = vpop.f32.mrb[6].mxu0  ;;  %v6045_v38 = vadd.f32 %v6010_v28, %v407_v35 }
 0x160   :  { %v6040_v37 = vadd.f32 %v4784_v36, %v6010_v28  ;;  %v410_v13 = vpop.f32.mrb[7].mxu0  ;;  %786 = vrot.lane.b32.xlu0 %v6035_v34, %s5684_s22  ;;  %v4390_v15 = vmul.f32 -1.442695, %v6035_v34 }
 0x161   :  { %v6050_v39 = vadd.f32 %v6010_v28, %v410_v13  ;;  %v4388_v50 = vmul.f32 -1.442695, %v6045_v38 }
 0x162   :  { %788 = vrot.lane.b32.xlu1 %v6040_v37, %s5684_s22  ;;  %v4391_v47 = vmul.f32 -1.442695, %v6040_v37  ;;  %5526 = vpow2.f32 %v4390_v15 }
 0x163   :  { %v4389_v2 = vmul.f32 -1.442695, %v6050_v39 }
 0x164   :  { %782 = vrot.lane.b32.xlu0 %v6045_v38, %s5684_s22  ;;  %v5519_v40 = vpop.eup %5518 }
 0x165   :  { %v4787_v12 = vpop.f32.mrb[8].mxu0  ;;  %v560_v8 = vadd.f32 1.0, %v5519_v40 }
 0x166   :  { %v6055_v41 = vadd.f32 %v4787_v12, %v6010_v28  ;;  %v423_v42 = vpop.f32.mrb[9].mxu0  ;;  %784 = vrot.lane.b32.xlu1 %v6050_v39, %s5684_s22  ;;  %v5521_v14 = vpop.eup %5520 }
 0x167   :  { %v4788_v43 = vpop.f32.mrb[10].mxu0  ;;  %v5523_v46 = vpop.eup %5522  ;;  %v6067_v9 = vadd.f32 %v6010_v28, %v423_v42  ;;  %v561_v48 = vadd.f32 1.0, %v5521_v14  ;;  %5528 = vrcp.f32 %v560_v8 }
 0x168   :  { %v6061_v44 = vadd.f32 %v4788_v43, %v6010_v28  ;;  %v426_v45 = vpop.f32.mrb[11].mxu0  ;;  %794 = vrot.lane.b32.xlu0 %v6055_v41, %s5684_s22  ;;  %v5525_v49 = vpop.eup %5524  ;;  %v558_v20 = vadd.f32 1.0, %v5523_v46  ;;  %5530 = vpow2.f32 %v4391_v47  ;;  %v4394_v54 = vmul.f32 -1.442695, %v6055_v41 }
 0x169   :  { %v6073_v21 = vadd.f32 %v6010_v28, %v426_v45  ;;  %5532 = vrcp.f32 %v561_v48  ;;  %v559_v23 = vadd.f32 1.0, %v5525_v49  ;;  %v4392_v58 = vmul.f32 -1.442695, %v6067_v9 }
 0x16a   :  { %796 = vrot.lane.b32.xlu1 %v6061_v44, %s5684_s22  ;;  %5534 = vpow2.f32 %v4388_v50  ;;  %v4395_v56 = vmul.f32 -1.442695, %v6061_v44 }
 0x16b   :  { %5536 = vrcp.f32 %v558_v20  ;;  %v4393_v62 = vmul.f32 -1.442695, %v6073_v21 }
 0x16c   :  { %790 = vrot.lane.b32.xlu0 %v6067_v9, %s5684_s22  ;;  %5538 = vpow2.f32 %v4389_v2  ;;  %v5527_v61 = vpop.eup %5526 }
 0x16d   :  { %v4791_v51 = vpop.f32.mrb[12].mxu0  ;;  %5540 = vrcp.f32 %v559_v23  ;;  %v564_v10 = vadd.f32 1.0, %v5527_v61 }
 0x16e   :  { %v6079_v4 = vadd.f32 %v4791_v51, %v6010_v28  ;;  %v439_v52 = vpop.f32.mrb[13].mxu0  ;;  %792 = vrot.lane.b32.xlu1 %v6073_v21, %s5684_s22  ;;  %5542 = vpow2.f32 %v4394_v54 }
 0x16f   :  { %v4792_v53 = vpop.f32.mrb[14].mxu0  ;;  %v6091_v57 = vadd.f32 %v6010_v28, %v439_v52  ;;  %5544 = vpow2.f32 %v4395_v56 }
 0x170   :  { %v6085_v22 = vadd.f32 %v4792_v53, %v6010_v28  ;;  %v442_v55 = vpop.f32.mrb[15].mxu0  ;;  %802 = vrot.lane.b32.xlu0 %v6079_v4, %s5684_s22  ;;  %5546 = vpow2.f32 %v4392_v58  ;;  %v4398_v5 = vmul.f32 -1.442695, %v6079_v4 }
 0x171   :  { %v6097_v59 = vadd.f32 %v6010_v28, %v442_v55  ;;  %v5529_v6 = vpop.eup %5528  ;;  %5548 = vpow2.f32 %v4393_v62  ;;  %v4396_v24 = vmul.f32 -1.442695, %v6091_v57 }
 0x172   :  { %804 = vrot.lane.b32.xlu1 %v6085_v22, %s5684_s22  ;;  %v5531_v7 = vpop.eup %5530  ;;  %v4399_v29 = vmul.f32 -1.442695, %v6085_v22  ;;  %5550 = vpow2.f32 %v4398_v5 }
 0x173   :  { %v5533_v26 = vpop.eup %5532  ;;  %v565_v0 = vadd.f32 1.0, %v5531_v7  ;;  %5552 = vrcp.f32 %v564_v10  ;;  %v4397_v13 = vmul.f32 -1.442695, %v6097_v59 }
 0x174   :  { %798 = vrot.lane.b32.xlu0 %v6091_v57, %s5684_s22  ;;  %v5535_v11 = vpop.eup %5534  ;;  %5554 = vpow2.f32 %v4399_v29 }
 0x175   :  { %v4795_v60 = vpop.f32.mrb[16].mxu0  ;;  %v5537_v17 = vpop.eup %5536  ;;  %v562_v33 = vadd.f32 1.0, %v5535_v11  ;;  %5556 = vrcp.f32 %v565_v0 }
 0x176   :  { %800 = vrot.lane.b32.xlu1 %v6097_v59, %s5684_s22  ;;  %v455_v63 = vpop.f32.mrb[17].mxu0  ;;  %v5539_v1 = vpop.eup %5538  ;;  %v6110_v25 = vadd.f32 %v4795_v60, %v6010_v28  ;;  %5558 = vpow2.f32 %v4396_v24 }
 0x177   :  { %v4796_v3 = vpop.f32.mrb[18].mxu0  ;;  %v5541_v32 = vpop.eup %5540  ;;  %v563_v42 = vadd.f32 1.0, %v5539_v1  ;;  %v6127_v45 = vadd.f32 %v6010_v28, %v455_v63  ;;  %5560 = vrcp.f32 %v562_v33 }
 0x178   :  { %658 = vrot.lane.b32.xlu0 %v5529_v6, %s5685_s2  ;;  %v458_v27 = vpop.f32.mrb[19].mxu0  ;;  %v5543_v36 = vpop.eup %5542  ;;  %v6122_v12 = vadd.f32 %v4796_v3, %v6010_v28  ;;  %v4402_v15 = vmul.f32 -1.442695, %v6110_v25  ;;  %5562 = vpow2.f32 %v4397_v13 }
 0x179   :  { %v5545_v14 = vpop.eup %5544  ;;  %v568_v47 = vadd.f32 1.0, %v5543_v36  ;;  %v6136_v50 = vadd.f32 %v6010_v28, %v458_v27  ;;  %5564 = vrcp.f32 %v563_v42  ;;  %v4400_v2 = vmul.f32 -1.442695, %v6127_v45 }
 0x17a   :  { %660 = vrot.lane.b32.xlu1 %v5533_v26, %s5685_s2  ;;  %v5547_v48 = vpop.eup %5546  ;;  %v4403_v49 = vmul.f32 -1.442695, %v6122_v12  ;;  %v569_v20 = vadd.f32 1.0, %v5545_v14  ;;  %5566 = vpow2.f32 %v4402_v15 }
 0x17b   :  { %v5549_v51 = vpop.eup %5548  ;;  %5568 = vrcp.f32 %v568_v47  ;;  %v566_v52 = vadd.f32 1.0, %v5547_v48  ;;  %v4401_v53 = vmul.f32 -1.442695, %v6136_v50 }
 0x17c   :  { %654 = vrot.lane.b32.xlu0 %v5537_v17, %s5685_s2  ;;  %v5551_v23 = vpop.eup %5550  ;;  %5570 = vpow2.f32 %v4403_v49  ;;  %v567_v55 = vadd.f32 1.0, %v5549_v51 }
 0x17d   :  { %v4799_v35 = vpop.f32.mrb[20].mxu0  ;;  %v5553_v54 = vpop.eup %5552  ;;  %5572 = vrcp.f32 %v569_v20  ;;  %v572_v61 = vadd.f32 1.0, %v5551_v23 }
 0x17e   :  { %656 = vrot.lane.b32.xlu1 %v5541_v32, %s5685_s2  ;;  %v471_v40 = vpop.f32.mrb[21].mxu0  ;;  %v5555_v56 = vpop.eup %5554  ;;  %5574 = vpow2.f32 %v4400_v2  ;;  %v6155_v5 = vadd.f32 %v4799_v35, %v6010_v28 }
 0x17f   :  { %v4800_v43 = vpop.f32.mrb[22].mxu0  ;;  %v6148_v58 = vadd.f32 %v6010_v28, %v471_v40  ;;  %v5557_v60 = vpop.eup %5556  ;;  %5576 = vrcp.f32 %v566_v52  ;;  %v573_v3 = vadd.f32 1.0, %v5555_v56 }
 0x180   :  { %810 = vrot.lane.b32.xlu0 %v6110_v25, %s5684_s22  ;;  %v6132_v8 = vadd.f32 %v4800_v43, %v6010_v28  ;;  %v474_v46 = vpop.f32.mrb[23].mxu0  ;;  %v5559_v62 = vpop.eup %5558  ;;  %5578 = vpow2.f32 %v4401_v53  ;;  %v4406_v24 = vmul.f32 -1.442695, %v6155_v5 }
 0x181   :  { %v6152_v63 = vadd.f32 %v6010_v28, %v474_v46  ;;  %v5561_v6 = vpop.eup %5560  ;;  %5580 = vrcp.f32 %v567_v55  ;;  %v4404_v27 = vmul.f32 -1.442695, %v6148_v58  ;;  %v570_v10 = vadd.f32 1.0, %v5559_v62 }
 0x182   :  { %812 = vrot.lane.b32.xlu1 %v6122_v12, %s5684_s22  ;;  %v5563_v7 = vpop.eup %5562  ;;  %5582 = vrcp.f32 %v572_v61  ;;  %v4407_v35 = vmul.f32 -1.442695, %v6132_v8 }
 0x183   :  { %v5565_v26 = vpop.eup %5564  ;;  %v4405_v29 = vmul.f32 -1.442695, %v6152_v63  ;;  %5584 = vrcp.f32 %v573_v3  ;;  %v571_v0 = vadd.f32 1.0, %v5563_v7 }
 0x184   :  { %806 = vrot.lane.b32.xlu0 %v6127_v45, %s5684_s22  ;;  %v5567_v11 = vpop.eup %5566  ;;  %5586 = vpow2.f32 %v4404_v27 }
 0x185   :  { %v5569_v17 = vpop.eup %5568  ;;  %5588 = vrcp.f32 %v570_v10  ;;  %v576_v32 = vadd.f32 1.0, %v5567_v11 }
 0x186   :  { %808 = vrot.lane.b32.xlu1 %v6136_v50, %s5684_s22  ;;  %v5571_v1 = vpop.eup %5570  ;;  %5590 = vpow2.f32 %v4405_v29 }
 0x187   :  { %v5573_v28 = vpop.eup %5572  ;;  %5592 = vrcp.f32 %v571_v0  ;;  %v577_v13 = vadd.f32 1.0, %v5571_v1 }
 0x188   :  { %666 = vrot.lane.b32.xlu0 %v5553_v54, %s5685_s2  ;;  %v5575_v33 = vpop.eup %5574  ;;  %5594 = vpow2.f32 %v4406_v24 }
 0x189   :  { %v5577_v36 = vpop.eup %5576  ;;  %5596 = vrcp.f32 %v576_v32  ;;  %v574_v43 = vadd.f32 1.0, %v5575_v33 }
 0x18a   :  { %668 = vrot.lane.b32.xlu1 %v5557_v60, %s5685_s2  ;;  %v5579_v40 = vpop.eup %5578  ;;  %5598 = vpow2.f32 %v4407_v35 }
 0x18b   :  { %v5581_v42 = vpop.eup %5580  ;;  %5600 = vrcp.f32 %v577_v13  ;;  %v575_v15 = vadd.f32 1.0, %v5579_v40 }
 0x18c   :  { %662 = vrot.lane.b32.xlu0 %v5561_v6, %s5685_s2  ;;  %v5583_v14 = vpop.eup %5582  ;;  %5602 = vrcp.f32 %v574_v43 }
 0x18d   :  { %v5585_v46 = vpop.eup %5584  ;;  %5604 = vrcp.f32 %v575_v15 }
 0x18e   :  { %664 = vrot.lane.b32.xlu1 %v5565_v26, %s5685_s2  ;;  %v5587_v47 = vpop.eup %5586 }
 0x18f   :  { %v5589_v48 = vpop.eup %5588  ;;  %v578_v51 = vadd.f32 1.0, %v5587_v47 }
 0x190   :  { %674 = vrot.lane.b32.xlu0 %v5569_v17, %s5685_s2  ;;  %v5591_v49 = vpop.eup %5590 }
 0x191   :  { %v5593_v20 = vpop.eup %5592  ;;  %v579_v23 = vadd.f32 1.0, %v5591_v49  ;;  %5606 = vrcp.f32 %v578_v51 }
 0x192   :  { %676 = vrot.lane.b32.xlu1 %v5573_v28, %s5685_s2  ;;  %v5595_v2 = vpop.eup %5594 }
 0x193   :  { %v5597_v52 = vpop.eup %5596  ;;  %v580_v55 = vadd.f32 1.0, %v5595_v2  ;;  %5608 = vrcp.f32 %v579_v23 }
 0x194   :  { %670 = vrot.lane.b32.xlu0 %v5577_v36, %s5685_s2  ;;  %v5599_v53 = vpop.eup %5598 }
 0x195   :  { %v5601_v54 = vpop.eup %5600  ;;  %v581_v60 = vadd.f32 1.0, %v5599_v53  ;;  %5610 = vrcp.f32 %v580_v55 }
 0x196   :  { %672 = vrot.lane.b32.xlu1 %v5581_v42, %s5685_s2  ;;  %v5603_v56 = vpop.eup %5602 }
 0x197   :  { %v5605_v61 = vpop.eup %5604  ;;  %5612 = vrcp.f32 %v581_v60 }
 0x198   :  { %682 = vrot.lane.b32.xlu0 %v5583_v14, %s5685_s2 }
 0x19a   :  { %684 = vrot.lane.b32.xlu1 %v5585_v46, %s5685_s2 }
 0x19b   :  { %v5607_v62 = vpop.eup %5606 }
 0x19c   :  { %678 = vrot.lane.b32.xlu0 %v5589_v48, %s5685_s2 }
 0x19d   :  { %v5609_v6 = vpop.eup %5608 }
 0x19e   :  { %680 = vrot.lane.b32.xlu1 %v5593_v20, %s5685_s2 }
 0x19f   :  { %v5611_v3 = vpop.eup %5610 }
 0x1a0   :  { %690 = vrot.lane.b32.xlu0 %v5597_v52, %s5685_s2 }
 0x1a1   :  { %v5613_v7 = vpop.eup %5612 }
 0x1a2   :  { %692 = vrot.lane.b32.xlu1 %v5601_v54, %s5685_s2 }
 0x1a4   :  { %686 = vrot.lane.b32.xlu0 %v5603_v56, %s5685_s2 }
 0x1a6   :  { %688 = vrot.lane.b32.xlu1 %v5605_v61, %s5685_s2 }
 0x1a8   :  { %814 = vrot.lane.b32.xlu0 %v6148_v58, %s5684_s22 }
 0x1aa   :  { %816 = vrot.lane.b32.xlu1 %v6152_v63, %s5684_s22 }
 0x1ac   :  { %694 = vrot.lane.b32.xlu0 %v5607_v62, %s5685_s2  ;;  %v6226_v62 = vld [vmem:[%s7051_s3 + $0x8] sm:$0xff] }
 0x1ae   :  { %696 = vrot.lane.b32.xlu1 %v5609_v6, %s5685_s2 }
 0x1b0   :  { %698 = vrot.lane.b32.xlu0 %v5611_v3, %s5685_s2 }
 0x1b2   :  { %700 = vrot.lane.b32.xlu1 %v5613_v7, %s5685_s2 }
 0x1b4   :  { %818 = vrot.lane.b32.xlu0 %v6155_v5, %s5684_s22 }
 0x1b6   :  { %820 = vrot.lane.b32.xlu1 %v6132_v8, %s5684_s22 }
 0x1ca   :  { %v779_v27 = vpop.permute.xlu0 %778 }
 0x1cc   :  { %v781_v26 = vpop.permute.xlu1 %780 }
 0x1ce   :  { %v775_v10 = vpop.permute.xlu0 %774 }
 0x1d0   :  { %v777_v11 = vpop.permute.xlu1 %776 }
 0x1d2   :  { %v787_v29 = vpop.permute.xlu0 %786 }
 0x1d4   :  { %v789_v17 = vpop.permute.xlu1 %788 }
 0x1d6   :  { %v783_v0 = vpop.permute.xlu0 %782 }
 0x1d8   :  { %v785_v1 = vpop.permute.xlu1 %784 }
 0x1da   :  { %v6187_v24 = vpop.permute.xlu0 %794 }
 0x1dc   :  { %v797_v28 = vpop.permute.xlu1 %796 }
 0x1de   :  { %v791_v32 = vpop.permute.xlu0 %790 }
 0x1e0   :  { %v6189_v33 = vpop.permute.xlu1 %792 }
 0x1e2   :  { %v6191_v35 = vpop.permute.xlu0 %802 }
 0x1e4   :  { %v6193_v36 = vpop.permute.xlu1 %804 }
 0x1e6   :  { %v6195_v13 = vpop.permute.xlu0 %798 }
 0x1e8   :  { %v6197_v40 = vpop.permute.xlu1 %800 }
 0x1ea   :  { %v659_v42 = vpop.permute.xlu0 %658 }
 0x1eb   :  { %v728_v46 = vmul.f32 %v659_v42, %v6013_v16 }
 0x1ec   :  { %v661_v43 = vpop.permute.xlu1 %660 }
 0x1ed   :  { %v729_v14 = vmul.f32 %v661_v43, %v6020_v19  ;;  %v848_v52 = vadd.f32 %v779_v27, %v728_v46 }
 0x1ee   :  { %v655_v15 = vpop.permute.xlu0 %654 }
 0x1ef   :  { %v726_v47 = vmul.f32 %v655_v15, %v6017_v18  ;;  %v849_v49 = vadd.f32 %v781_v26, %v729_v14  ;;  %v6215_v18 = vmax.f32 %v848_v52, 0.0 }
 0x1f0   :  { %v657_v48 = vpop.permute.xlu1 %656 }
 0x1f1   :  { %v846_v20 = vadd.f32 %v775_v10, %v726_v47  ;;  %v727_v51 = vmul.f32 %v657_v48, %v6026_v30  ;;  %v6207_v54 = vmax.f32 %v849_v49, 0.0 }
 0x1f2   :  { %v6203_v2 = vpop.permute.xlu0 %810 }
 0x1f3   :  { %v847_v23 = vadd.f32 %v777_v11, %v727_v51  ;;  %v6209_v55 = vmax.f32 %v846_v20, 0.0  ;;  %v5133_v60 = vpack.c.bf16 %v6207_v54, %v6215_v18 }
 0x1f4   :  { %v6205_v53 = vpop.permute.xlu1 %812 }
 0x1f5   :  { %v6211_v19 = vmax.f32 %v847_v23, 0.0 }
 0x1f6   :  { %v6213_v16 = vpop.permute.xlu0 %806 }
 0x1f7   :  { %v5129_v56 = vpack.c.bf16 %v6211_v19, %v6209_v55 }
 0x1f8   :  { %v6219_v30 = vpop.permute.xlu1 %808 }
 0x1f9   :  { %5130 = vmatprep.subr.bf16.mxu1 %v5129_v56 }
 0x1fa   :  { %5132 = vmatpush3.bf16.msra.mxu1 %v5129_v56  ;;  %v667_v61 = vpop.permute.xlu0 %666 }
 0x1fb   :  { %5134 = vmatprep.subr.bf16.mxu1 %v5133_v60  ;;  %v732_v27 = vmul.f32 %v667_v61, %v6035_v34 }
 0x1fc   :  { %v669_v6 = vpop.permute.xlu1 %668 }
 0x1fd   :  { %v733_v3 = vmul.f32 %v669_v6, %v6040_v37  ;;  %4806 = vmatmul.mubr.msk.f32.vlgmr.msra.gmra.mrb[0].mxu1 %vm900_vm4, %v6226_v62  ;;  %v852_v14 = vadd.f32 %v787_v29, %v732_v27 }
 0x1fe   :  { %5136 = vmatpush3.bf16.msra.mxu1 %v5133_v60  ;;  %v663_v7 = vpop.permute.xlu0 %662  ;;  %4812 = vmatprep.mubr.msk.f32.mxu1 %vm900_vm4, %v6116_v31 }
 0x1ff   :  { %v730_v26 = vmul.f32 %v663_v7, %v6045_v38  ;;  %v853_v11 = vadd.f32 %v789_v17, %v733_v3 }
 0x200   :  { %v665_v10 = vpop.permute.xlu1 %664 }
 0x201   :  { %v850_v42 = vadd.f32 %v783_v0, %v730_v26  ;;  %v731_v43 = vmul.f32 %v665_v10, %v6050_v39  ;;  %4813 = vmatmul.mubr.msk.f32.vlgmr.msra.gmra.mrb[2].mxu1 %vm900_vm4, %v6226_v62  ;;  %v6240_v47 = vmax.f32 %v853_v11, 0.0  ;;  %v6247_v39 = vmax.f32 %v852_v14, 0.0 }
 0x202   :  { %v675_v37 = vpop.permute.xlu0 %674  ;;  %4819 = vmatprep.mubr.msk.f32.mxu1 %vm900_vm4, %v6116_v31 }
 0x203   :  { %v851_v15 = vadd.f32 %v785_v1, %v731_v43  ;;  %v6242_v34 = vmax.f32 %v850_v42, 0.0  ;;  %v736_v48 = vmul.f32 %v675_v37, %v6055_v41  ;;  %v5141_v23 = vpack.c.bf16 %v6240_v47, %v6247_v39 }
 0x204   :  { %v677_v46 = vpop.permute.xlu1 %676 }
 0x205   :  { %v6244_v38 = vmax.f32 %v851_v15, 0.0  ;;  %v737_v17 = vmul.f32 %v677_v46, %v6061_v44  ;;  %v856_v56 = vadd.f32 %v6187_v24, %v736_v48 }
 0x206   :  { %v671_v0 = vpop.permute.xlu0 %670 }
 0x207   :  { %v734_v49 = vmul.f32 %v671_v0, %v6067_v9  ;;  %v5137_v29 = vpack.c.bf16 %v6244_v38, %v6242_v34  ;;  %v857_v20 = vadd.f32 %v797_v28, %v737_v17  ;;  %v6270_v24 = vmax.f32 %v856_v56, 0.0 }
 0x208   :  { %v673_v1 = vpop.permute.xlu1 %672 }
 0x209   :  { %v854_v51 = vadd.f32 %v791_v32, %v734_v49  ;;  %v735_v52 = vmul.f32 %v673_v1, %v6073_v21  ;;  %5138 = vmatprep.subr.bf16.mxu1 %v5137_v29  ;;  %v6258_v60 = vmax.f32 %v857_v20, 0.0 }
 0x20a   :  { %5140 = vmatpush3.bf16.msra.mxu1 %v5137_v29  ;;  %v683_v44 = vpop.permute.xlu0 %682 }
 0x20b   :  { %v855_v41 = vadd.f32 %v6189_v33, %v735_v52  ;;  %5142 = vmatprep.subr.bf16.mxu1 %v5141_v23  ;;  %v6260_v61 = vmax.f32 %v854_v51, 0.0  ;;  %v740_v32 = vmul.f32 %v683_v44, %v6079_v4  ;;  %v5149_v4 = vpack.c.bf16 %v6258_v60, %v6270_v24 }
 0x20c   :  { %v685_v9 = vpop.permute.xlu1 %684 }
 0x20d   :  { %v6262_v28 = vmax.f32 %v855_v41, 0.0  ;;  %v741_v21 = vmul.f32 %v685_v9, %v6085_v22  ;;  %4820 = vmatmul.mubr.msk.f32.vlgmr.msra.gmra.mrb[4].mxu1 %vm900_vm4, %v6226_v62  ;;  %v860_v10 = vadd.f32 %v6191_v35, %v740_v32 }
 0x20e   :  { %5144 = vmatpush3.bf16.msra.mxu1 %v5141_v23  ;;  %v679_v6 = vpop.permute.xlu0 %678  ;;  %4826 = vmatprep.mubr.msk.f32.mxu1 %vm900_vm4, %v6116_v31 }
 0x20f   :  { %v738_v33 = vmul.f32 %v679_v6, %v6091_v57  ;;  %v5145_v3 = vpack.c.bf16 %v6262_v28, %v6260_v61  ;;  %v861_v7 = vadd.f32 %v6193_v36, %v741_v21  ;;  %v6295_v35 = vmax.f32 %v860_v10, 0.0 }
 0x210   :  { %v681_v22 = vpop.permute.xlu1 %680 }
 0x211   :  { %v858_v27 = vadd.f32 %v6195_v13, %v738_v33  ;;  %v739_v26 = vmul.f32 %v681_v22, %v6097_v59  ;;  %4827 = vmatmul.mubr.msk.f32.vlgmr.msra.gmra.mrb[6].mxu1 %vm900_vm4, %v6226_v62  ;;  %5146 = vmatprep.subr.bf16.mxu1 %v5145_v3  ;;  %v6286_v13 = vmax.f32 %v861_v7, 0.0 }
 0x212   :  { %5148 = vmatpush3.bf16.msra.mxu1 %v5145_v3  ;;  %v691_v57 = vpop.permute.xlu0 %690  ;;  %4833 = vmatprep.mubr.msk.f32.mxu1 %vm900_vm4, %v6116_v31 }
 0x213   :  { %v859_v36 = vadd.f32 %v6197_v40, %v739_v26  ;;  %5150 = vmatprep.subr.bf16.mxu1 %v5149_v4  ;;  %v6288_v11 = vmax.f32 %v858_v27, 0.0  ;;  %v744_v40 = vmul.f32 %v691_v57, %v6110_v25  ;;  %v4432_v26 = vld [vmem:[%s7052_s4 + $0x20] sm:$0xff]  ;;  %v4434_v57 = vld [vmem:[%s7052_s4 + $0x30] sm:$0xff] }
 0x214   :  { %v693_v59 = vpop.permute.xlu1 %692 }
 0x215   :  { %v6290_v42 = vmax.f32 %v859_v36, 0.0  ;;  %v745_v43 = vmul.f32 %v693_v59, %v6122_v12  ;;  %4834 = vmatmul.mubr.msk.f32.vlgmr.msra.gmra.mrb[8].mxu1 %vm900_vm4, %v6226_v62  ;;  %v5157_v12 = vpack.c.bf16 %v6286_v13, %v6295_v35  ;;  %v4435_v36 = vld [vmem:[%s7052_s4 + $0x38] sm:$0xff] }
 0x216   :  { %5152 = vmatpush3.bf16.msra.mxu1 %v5149_v4  ;;  %v687_v37 = vpop.permute.xlu0 %686  ;;  %4840 = vmatprep.mubr.msk.f32.mxu1 %vm900_vm4, %v6116_v31  ;;  %v4433_v4 = vld [vmem:[%s7052_s4 + $0x28] sm:$0xff]  ;;  %v5181_v59 = vpack.c.bf16 %v4435_v36, %v4434_v57 }
 0x217   :  { %v742_v14 = vmul.f32 %v687_v37, %v6127_v45  ;;  %v5153_v15 = vpack.c.bf16 %v6290_v42, %v6288_v11  ;;  %v865_v17 = vadd.f32 %v6205_v53, %v745_v43  ;;  %v864_v45 = vadd.f32 %v6203_v2, %v744_v40  ;;  %v894_v43 = vld [vmem:[%s7052_s4] sm:$0xff]  ;;  %v895_v37 = vld [vmem:[%s7052_s4 + $0x8] sm:$0xff] }
 0x218   :  { %v689_v46 = vpop.permute.xlu1 %688  ;;  %v5177_v10 = vpack.c.bf16 %v4433_v4, %v4432_v26  ;;  %v5185_v40 = vpack.c.bf16 %v895_v37, %v894_v43 }
 0x219   :  { %v862_v0 = vadd.f32 %v6213_v16, %v742_v14  ;;  %v743_v48 = vmul.f32 %v689_v46, %v6136_v50  ;;  %4841 = vmatmul.mubr.msk.f32.vlgmr.msra.gmra.mrb[10].mxu1 %vm900_vm4, %v6226_v62  ;;  %5154 = vmatprep.subr.bf16.mxu1 %v5153_v15  ;;  %v6314_v53 = vmax.f32 %v865_v17, 0.0  ;;  %v6324_v20 = vmax.f32 %v864_v45, 0.0  ;;  %v896_v14 = vld [vmem:[%s7052_s4 + $0x10] sm:$0xff]  ;;  %v4509_v45 = vld [vmem:[%s7052_s4 + $0x48] sm:$0xff] }
 0x21a   :  { %5156 = vmatpush3.bf16.msra.mxu1 %v5153_v15  ;;  %v815_v25 = vpop.permute.xlu0 %814  ;;  %4847 = vmatprep.mubr.msk.f32.mxu1 %vm900_vm4, %v6116_v31  ;;  %v897_v15 = vld [vmem:[%s7052_s4 + $0x18] sm:$0xff] }
 0x21b   :  { %v863_v49 = vadd.f32 %v6219_v30, %v743_v48  ;;  %5158 = vmatprep.subr.bf16.mxu1 %v5157_v12  ;;  %v6316_v16 = vmax.f32 %v862_v0, 0.0  ;;  %v5165_v44 = vpack.c.bf16 %v6314_v53, %v6324_v20  ;;  %5178 = vmatprep.subr.bf16.mxu0 %v5177_v10  ;;  %v5189_v17 = vpack.c.bf16 %v897_v15, %v896_v14 }
 0x21c   :  { %v817_v29 = vpop.permute.xlu1 %816  ;;  %5180 = vmatpush3.bf16.msra.mxu0 %v5177_v10 }
 0x21d   :  { %v6318_v50 = vmax.f32 %v863_v49, 0.0  ;;  %4848 = vmatmul.mubr.msk.f32.vlgmr.msra.gmra.mrb[12].mxu1 %vm900_vm4, %v6226_v62  ;;  %5182 = vmatprep.subr.bf16.mxu0 %v5181_v59 }
 0x21e   :  { %5160 = vmatpush3.bf16.msra.mxu1 %v5157_v12  ;;  %v695_v1 = vpop.permute.xlu0 %694  ;;  %4854 = vmatprep.mubr.msk.f32.mxu1 %vm900_vm4, %v6116_v31 }
 0x21f   :  { %v746_v2 = vmul.f32 %v695_v1, %v6148_v58  ;;  %v5161_v30 = vpack.c.bf16 %v6318_v50, %v6316_v16 }
 0x220   :  { %v697_v51 = vpop.permute.xlu1 %696  ;;  %5184 = vmatpush3.bf16.msra.mxu0 %v5181_v59 }
 0x221   :  { %v866_v52 = vadd.f32 %v815_v25, %v746_v2  ;;  %v747_v23 = vmul.f32 %v697_v51, %v6152_v63  ;;  %4855 = vmatmul.mubr.msk.f32.vlgmr.msra.gmra.mrb[14].mxu1 %vm900_vm4, %v6226_v62  ;;  %5162 = vmatprep.subr.bf16.mxu1 %v5161_v30  ;;  %v4508_v25 = vld [vmem:[%s7052_s4 + $0x40] sm:$0xff] }
 0x222   :  { %5164 = vmatpush3.bf16.msra.mxu1 %v5161_v30  ;;  %v699_v56 = vpop.permute.xlu0 %698  ;;  %4861 = vmatprep.mubr.msk.f32.mxu1 %vm900_vm4, %v6116_v31  ;;  %v6400_v1 = vpack.c.bf16 %v4509_v45, %v4508_v25 }
 0x223   :  { %v867_v58 = vadd.f32 %v817_v29, %v747_v23  ;;  %5166 = vmatprep.subr.bf16.mxu1 %v5165_v44  ;;  %v6336_v9 = vmax.f32 %v866_v52, 0.0  ;;  %v748_v63 = vmul.f32 %v699_v56, %v6155_v5  ;;  %5186 = vmatprep.subr.bf16.mxu0 %v5185_v40 }
 0x224   :  { %v701_v41 = vpop.permute.xlu1 %700 }
 0x225   :  { %v6338_v21 = vmax.f32 %v867_v58, 0.0  ;;  %4862 = vmatmul.mubr.msk.f32.vlgmr.msra.gmra.mrb[16].mxu1 %vm900_vm4, %v6226_v62  ;;  %v749_v6 = vmul.f32 %v701_v41, %v6132_v8 }
 0x226   :  { %5168 = vmatpush3.bf16.msra.mxu1 %v5165_v44  ;;  %v819_v32 = vpop.permute.xlu0 %818  ;;  %4868 = vmatprep.mubr.msk.f32.mxu1 %vm900_vm4, %v6116_v31 }
 0x227   :  { %v868_v33 = vadd.f32 %v819_v32, %v748_v63  ;;  %v5169_v3 = vpack.c.bf16 %v6338_v21, %v6336_v9 }
 0x228   :  { %v821_v7 = vpop.permute.xlu1 %820 }
 0x229   :  { %v869_v22 = vadd.f32 %v821_v7, %v749_v6  ;;  %4869 = vmatmul.mubr.msk.f32.vlgmr.msra.gmra.mrb[18].mxu1 %vm900_vm4, %v6226_v62  ;;  %5170 = vmatprep.subr.bf16.mxu1 %v5169_v3  ;;  %v6352_v5 = vmax.f32 %v868_v33, 0.0 }
 0x22a   :  { %5172 = vmatpush3.bf16.msra.mxu1 %v5169_v3  ;;  %4875 = vmatprep.mubr.msk.f32.mxu1 %vm900_vm4, %v6116_v31 }
 0x22b   :  { %v6354_v27 = vmax.f32 %v869_v22, 0.0 }
 0x22d   :  { %4876 = vmatmul.mubr.msk.f32.vlgmr.msra.gmra.mrb[20].mxu1 %vm900_vm4, %v6226_v62  ;;  %v5173_v8 = vpack.c.bf16 %v6354_v27, %v6352_v5 }
 0x22e   :  { %4882 = vmatprep.mubr.msk.f32.mxu1 %vm900_vm4, %v6116_v31 }
 0x22f   :  { %5174 = vmatprep.subr.bf16.mxu1 %v5173_v8 }
 0x230   :  { %5176 = vmatpush3.bf16.msra.mxu1 %v5173_v8 }
 0x233   :  { %4883 = vmatmul.mubr.msk.f32.vlgmr.msra.gmra.mrb[22].mxu1 %vm900_vm4, %v6226_v62 }
 0x234   :  { %4977 = vmatprep.mubr.msk.f32.mxu1 %vm900_vm4, %v6116_v31 }
 0x2d0   :  { %v4807_v46 = vpop.f32.mrb[0].mxu1 }
 0x2d1   :  { %v973_v12 = vpop.f32.mrb[1].mxu1 }
 0x2d2   :  { %v5193_v0 = vpack.c.bf16 %v4807_v46, %v973_v12  ;;  %4893 = vmatprep.mubr.msk.f32.mxu0 %vm1812_vm5, %v973_v12 }
 0x2d3   :  { %4894 = vmatmul.mubr.msk.f32.vlgmr.msra.gmra.mrb[24].mxu0 %vm1812_vm5, %v4807_v46 }
 0x2d4   :  { %v4814_v48 = vpop.f32.mrb[2].mxu1  ;;  %5194 = vmatprep.subr.bf16.mxu1 %v5193_v0  ;;  %5188 = vmatpush3.bf16.msra.mxu0 %v5185_v40 }
 0x2d5   :  { %v1048_v49 = vpop.f32.mrb[3].mxu1  ;;  %5196 = vmatpush3.bf16.msra.mxu1 %v5193_v0  ;;  %5190 = vmatprep.subr.bf16.mxu0 %v5189_v17  ;;  %v4511_v0 = vld [vmem:[%s7052_s4 + $0x58] sm:$0xff] }
 0x2d6   :  { %v5197_v29 = vpack.c.bf16 %v4814_v48, %v1048_v49  ;;  %4896 = vmatprep.mubr.msk.f32.mxu0 %vm1812_vm5, %v1048_v49 }
 0x2d7   :  { %4897 = vmatmul.mubr.msk.f32.gmra.mrb[26].mxu0 %vm1812_vm5, %v4814_v48 }
 0x2d8   :  { %4978 = vmatmul.mubr.msk.f32.vlgmr.msra.gmra.mrb[24].mxu1 %vm900_vm4, %v6226_v62  ;;  %5198 = vmatprep.subr.bf16.mxu1 %v5197_v29 }
 0x2d9   :  { %5200 = vmatpush3.bf16.msra.mxu1 %v5197_v29  ;;  %4984 = vmatprep.mubr.msk.f32.mxu1 %vm900_vm4, %v6116_v31 }
 0x2da   :  { %5192 = vmatpush3.bf16.msra.mxu0 %v5189_v17  ;;  %v4510_v17 = vld [vmem:[%s7052_s4 + $0x50] sm:$0xff] }
 0x2db   :  { %5242 = vmatprep.subr.bf16.mxu0 %v6400_v1  ;;  %v5245_v48 = vpack.c.bf16 %v4511_v0, %v4510_v17 }
 0x2dc   :  { %4985 = vmatmul.mubr.msk.f32.vlgmr.msra.gmra.mrb[26].mxu1 %vm900_vm4, %v6226_v62 }
 0x2dd   :  { %4991 = vmatprep.mubr.msk.f32.mxu1 %vm900_vm4, %v6116_v31 }
 0x2e0   :  { %v4821_v2 = vpop.f32.mrb[4].mxu1 }
 0x2e1   :  { %v1123_v30 = vpop.f32.mrb[5].mxu1 }
 0x2e2   :  { %v5201_v51 = vpack.c.bf16 %v4821_v2, %v1123_v30  ;;  %4899 = vmatprep.mubr.msk.f32.mxu0 %vm1812_vm5, %v1123_v30 }
 0x2e3   :  { %4900 = vmatmul.mubr.msk.f32.gmra.mrb[28].mxu0 %vm1812_vm5, %v4821_v2 }
 0x2e4   :  { %v4828_v52 = vpop.f32.mrb[6].mxu1  ;;  %5202 = vmatprep.subr.bf16.mxu1 %v5201_v51 }
 0x2e5   :  { %v1198_v23 = vpop.f32.mrb[7].mxu1  ;;  %5204 = vmatpush3.bf16.msra.mxu1 %v5201_v51 }
 0x2e6   :  { %v5205_v44 = vpack.c.bf16 %v4828_v52, %v1198_v23  ;;  %4902 = vmatprep.mubr.msk.f32.mxu0 %vm1812_vm5, %v1198_v23 }
 0x2e7   :  { %4903 = vmatmul.mubr.msk.f32.gmra.mrb[30].mxu0 %vm1812_vm5, %v4828_v52 }
 0x2e8   :  { %v4835_v56 = vpop.f32.mrb[8].mxu1  ;;  %4992 = vmatmul.mubr.msk.f32.vlgmr.msra.gmra.mrb[28].mxu1 %vm900_vm4, %v6226_v62  ;;  %5206 = vmatprep.subr.bf16.mxu1 %v5205_v44 }
 0x2e9   :  { %v1273_v58 = vpop.f32.mrb[9].mxu1  ;;  %5208 = vmatpush3.bf16.msra.mxu1 %v5205_v44  ;;  %4998 = vmatprep.mubr.msk.f32.mxu1 %vm900_vm4, %v6116_v31 }
 0x2ea   :  { %v5209_v41 = vpack.c.bf16 %v4835_v56, %v1273_v58  ;;  %4905 = vmatprep.mubr.msk.f32.mxu0 %vm1812_vm5, %v1273_v58 }
 0x2eb   :  { %4906 = vmatmul.mubr.msk.f32.gmra.mrb[32].mxu0 %vm1812_vm5, %v4835_v56 }
 0x2ec   :  { %v4842_v63 = vpop.f32.mrb[10].mxu1  ;;  %4999 = vmatmul.mubr.msk.f32.vlgmr.msra.gmra.mrb[30].mxu1 %vm900_vm4, %v6226_v62  ;;  %5210 = vmatprep.subr.bf16.mxu1 %v5209_v41 }
 0x2ed   :  { %v1348_v32 = vpop.f32.mrb[11].mxu1  ;;  %5212 = vmatpush3.bf16.msra.mxu1 %v5209_v41  ;;  %5005 = vmatprep.mubr.msk.f32.mxu1 %vm900_vm4, %v6116_v31 }
 0x2ee   :  { %v5213_v6 = vpack.c.bf16 %v4842_v63, %v1348_v32  ;;  %4908 = vmatprep.mubr.msk.f32.mxu0 %vm1812_vm5, %v1348_v32 }
 0x2ef   :  { %4909 = vmatmul.mubr.msk.f32.gmra.mrb[34].mxu0 %vm1812_vm5, %v4842_v63 }
 0x2f0   :  { %v4849_v33 = vpop.f32.mrb[12].mxu1  ;;  %5006 = vmatmul.mubr.msk.f32.vlgmr.msra.gmra.mrb[32].mxu1 %vm900_vm4, %v6226_v62  ;;  %5214 = vmatprep.subr.bf16.mxu1 %v5213_v6 }
 0x2f1   :  { %v1423_v3 = vpop.f32.mrb[13].mxu1  ;;  %5216 = vmatpush3.bf16.msra.mxu1 %v5213_v6  ;;  %5012 = vmatprep.mubr.msk.f32.mxu1 %vm900_vm4, %v6116_v31 }
 0x2f2   :  { %v5217_v7 = vpack.c.bf16 %v4849_v33, %v1423_v3  ;;  %4911 = vmatprep.mubr.msk.f32.mxu0 %vm1812_vm5, %v1423_v3 }
 0x2f3   :  { %4912 = vmatmul.mubr.msk.f32.gmra.mrb[36].mxu0 %vm1812_vm5, %v4849_v33 }
 0x2f4   :  { %v4856_v22 = vpop.f32.mrb[14].mxu1  ;;  %5013 = vmatmul.mubr.msk.f32.vlgmr.msra.gmra.mrb[34].mxu1 %vm900_vm4, %v6226_v62  ;;  %5218 = vmatprep.subr.bf16.mxu1 %v5217_v7 }
 0x2f5   :  { %v1498_v8 = vpop.f32.mrb[15].mxu1  ;;  %5220 = vmatpush3.bf16.msra.mxu1 %v5217_v7  ;;  %5019 = vmatprep.mubr.msk.f32.mxu1 %vm900_vm4, %v6116_v31 }
 0x2f6   :  { %v5221_v26 = vpack.c.bf16 %v4856_v22, %v1498_v8  ;;  %4914 = vmatprep.mubr.msk.f32.mxu0 %vm1812_vm5, %v1498_v8 }
 0x2f7   :  { %4915 = vmatmul.mubr.msk.f32.gmra.mrb[38].mxu0 %vm1812_vm5, %v4856_v22 }
 0x2f8   :  { %v4863_v4 = vpop.f32.mrb[16].mxu1  ;;  %5020 = vmatmul.mubr.msk.f32.vlgmr.msra.gmra.mrb[36].mxu1 %vm900_vm4, %v6226_v62  ;;  %5222 = vmatprep.subr.bf16.mxu1 %v5221_v26 }
 0x2f9   :  { %v1573_v10 = vpop.f32.mrb[17].mxu1  ;;  %5224 = vmatpush3.bf16.msra.mxu1 %v5221_v26  ;;  %5026 = vmatprep.mubr.msk.f32.mxu1 %vm900_vm4, %v6116_v31 }
 0x2fa   :  { %v5225_v57 = vpack.c.bf16 %v4863_v4, %v1573_v10  ;;  %4917 = vmatprep.mubr.msk.f32.mxu0 %vm1812_vm5, %v1573_v10 }
 0x2fb   :  { %4918 = vmatmul.mubr.msk.f32.gmra.mrb[40].mxu0 %vm1812_vm5, %v4863_v4 }
 0x2fc   :  { %v4870_v36 = vpop.f32.mrb[18].mxu1  ;;  %5027 = vmatmul.mubr.msk.f32.vlgmr.msra.gmra.mrb[38].mxu1 %vm900_vm4, %v6226_v62  ;;  %5226 = vmatprep.subr.bf16.mxu1 %v5225_v57 }
 0x2fd   :  { %v1648_v59 = vpop.f32.mrb[19].mxu1  ;;  %5228 = vmatpush3.bf16.msra.mxu1 %v5225_v57  ;;  %5033 = vmatprep.mubr.msk.f32.mxu1 %vm900_vm4, %v6116_v31 }
 0x2fe   :  { %v5229_v43 = vpack.c.bf16 %v4870_v36, %v1648_v59  ;;  %4920 = vmatprep.mubr.msk.f32.mxu0 %vm1812_vm5, %v1648_v59 }
 0x2ff   :  { %4921 = vmatmul.mubr.msk.f32.gmra.mrb[42].mxu0 %vm1812_vm5, %v4870_v36 }
 0x300   :  { %v4877_v37 = vpop.f32.mrb[20].mxu1  ;;  %5034 = vmatmul.mubr.msk.f32.vlgmr.msra.gmra.mrb[40].mxu1 %vm900_vm4, %v6226_v62  ;;  %5230 = vmatprep.subr.bf16.mxu1 %v5229_v43 }
 0x301   :  { %v1723_v40 = vpop.f32.mrb[21].mxu1  ;;  %5232 = vmatpush3.bf16.msra.mxu1 %v5229_v43  ;;  %5040 = vmatprep.mubr.msk.f32.mxu1 %vm900_vm4, %v6116_v31 }
 0x302   :  { %v5233_v14 = vpack.c.bf16 %v4877_v37, %v1723_v40  ;;  %4923 = vmatprep.mubr.msk.f32.mxu0 %vm1812_vm5, %v1723_v40 }
 0x303   :  { %4924 = vmatmul.mubr.msk.f32.gmra.mrb[44].mxu0 %vm1812_vm5, %v4877_v37 }
 0x304   :  { %5041 = vmatmul.mubr.msk.f32.vlgmr.msra.gmra.mrb[42].mxu1 %vm900_vm4, %v6226_v62  ;;  %5234 = vmatprep.subr.bf16.mxu1 %v5233_v14 }
 0x305   :  { %5236 = vmatpush3.bf16.msra.mxu1 %v5233_v14  ;;  %5047 = vmatprep.mubr.msk.f32.mxu1 %vm900_vm4, %v6116_v31 }
 0x306   :  { %v4884_v15 = vpop.f32.mrb[22].mxu1 }
 0x307   :  { %v1798_v46 = vpop.f32.mrb[23].mxu1 }
 0x308   :  { %v5237_v12 = vpack.c.bf16 %v4884_v15, %v1798_v46  ;;  %4926 = vmatprep.mubr.msk.f32.mxu0 %vm1812_vm5, %v1798_v46  ;;  %5048 = vmatmul.mubr.msk.f32.vlgmr.msra.gmra.mrb[44].mxu1 %vm900_vm4, %v6226_v62 }
 0x309   :  { %4927 = vmatmul.mubr.msk.f32.gmra.mrb[46].mxu0 %vm1812_vm5, %v4884_v15  ;;  %5054 = vmatprep.mubr.msk.f32.mxu1 %vm900_vm4, %v6116_v31 }
 0x30a   :  { %4937 = vmatprep.mubr.msk.f32.mxu0 %vm1812_vm5, %v6209_v55  ;;  %5238 = vmatprep.subr.bf16.mxu1 %v5237_v12 }
 0x30b   :  { %5240 = vmatpush3.bf16.msra.mxu1 %v5237_v12 }
 0x30c   :  { %5249 = vmatprep.subr.bf16.mxu1 %v6400_v1 }
 0x30d   :  { %4938 = vmatmul.mubr.msk.f32.vlgmr.msra.gmra.mrb[24].mxu0 %vm1812_vm5, %v6211_v19 }
 0x30e   :  { %4940 = vmatprep.mubr.msk.f32.mxu0 %vm1812_vm5, %v6215_v18  ;;  %5055 = vmatmul.mubr.msk.f32.vlgmr.msra.gmra.mrb[46].mxu1 %vm900_vm4, %v6226_v62 }
 0x30f   :  { %5244 = vmatpush3.bf16.msra.mxu0 %v6400_v1  ;;  %5251 = vmatpush3.bf16.msra.mxu1 %v6400_v1 }
 0x310   :  { %5246 = vmatprep.subr.bf16.mxu0 %v5245_v48  ;;  %5250 = vmatprep.subr.bf16.mxu1 %v5245_v48 }
 0x311   :  { %4941 = vmatmul.mubr.msk.f32.gmra.mrb[26].mxu0 %vm1812_vm5, %v6207_v54 }
 0x312   :  { %4943 = vmatprep.mubr.msk.f32.mxu0 %vm1812_vm5, %v6242_v34 }
 0x313   :  { %5248 = vmatpush3.bf16.msra.mxu0 %v5245_v48  ;;  %5252 = vmatpush3.bf16.msra.mxu1 %v5245_v48 }
 0x315   :  { %4944 = vmatmul.mubr.msk.f32.gmra.mrb[28].mxu0 %vm1812_vm5, %v6244_v38 }
 0x316   :  { %4946 = vmatprep.mubr.msk.f32.mxu0 %vm1812_vm5, %v6247_v39 }
 0x319   :  { %4947 = vmatmul.mubr.msk.f32.gmra.mrb[30].mxu0 %vm1812_vm5, %v6240_v47 }
 0x31a   :  { %4949 = vmatprep.mubr.msk.f32.mxu0 %vm1812_vm5, %v6260_v61 }
 0x31d   :  { %4950 = vmatmul.mubr.msk.f32.gmra.mrb[32].mxu0 %vm1812_vm5, %v6262_v28 }
 0x31e   :  { %4952 = vmatprep.mubr.msk.f32.mxu0 %vm1812_vm5, %v6270_v24 }
 0x321   :  { %4953 = vmatmul.mubr.msk.f32.gmra.mrb[34].mxu0 %vm1812_vm5, %v6258_v60 }
 0x322   :  { %4955 = vmatprep.mubr.msk.f32.mxu0 %vm1812_vm5, %v6288_v11 }
 0x325   :  { %4956 = vmatmul.mubr.msk.f32.gmra.mrb[36].mxu0 %vm1812_vm5, %v6290_v42 }
 0x326   :  { %4958 = vmatprep.mubr.msk.f32.mxu0 %vm1812_vm5, %v6295_v35 }
 0x329   :  { %4959 = vmatmul.mubr.msk.f32.gmra.mrb[38].mxu0 %vm1812_vm5, %v6286_v13 }
 0x32a   :  { %4961 = vmatprep.mubr.msk.f32.mxu0 %vm1812_vm5, %v6316_v16 }
 0x32d   :  { %4962 = vmatmul.mubr.msk.f32.gmra.mrb[40].mxu0 %vm1812_vm5, %v6318_v50 }
 0x32e   :  { %4964 = vmatprep.mubr.msk.f32.mxu0 %vm1812_vm5, %v6324_v20 }
 0x331   :  { %4965 = vmatmul.mubr.msk.f32.gmra.mrb[42].mxu0 %vm1812_vm5, %v6314_v53 }
 0x332   :  { %4967 = vmatprep.mubr.msk.f32.mxu0 %vm1812_vm5, %v6336_v9 }
 0x335   :  { %4968 = vmatmul.mubr.msk.f32.gmra.mrb[44].mxu0 %vm1812_vm5, %v6338_v21 }
 0x336   :  { %4970 = vmatprep.mubr.msk.f32.mxu0 %vm1812_vm5, %v6352_v5 }
 0x339   :  { %4971 = vmatmul.mubr.msk.f32.gmra.mrb[46].mxu0 %vm1812_vm5, %v6354_v27 }
 0x3ab   :  { %v4979_v31 = vpop.f32.mrb[24].mxu1 }
 0x3ac   :  { %v3228_v62 = vmul.f32 2.0, %v4979_v31  ;;  %v2393_v25 = vpop.f32.mrb[25].mxu1 }
 0x3ad   :  { %v3227_v45 = vmul.f32 2.0, %v2393_v25 }
 0x3ae   :  { %v3252_v1 = vsub.f32 %v3228_v62, %v6211_v19 }
 0x3af   :  { %v3251_v49 = vsub.f32 %v3227_v45, %v6209_v55  ;;  %v4986_v29 = vpop.f32.mrb[26].mxu1 }
 0x3b0   :  { %v3230_v2 = vmul.f32 2.0, %v4986_v29  ;;  %v2468_v30 = vpop.f32.mrb[27].mxu1 }
 0x3b1   :  { %v3229_v51 = vmul.f32 2.0, %v2468_v30  ;;  %5065 = vmatprep.mubr.msk.f32.mxu0 %vm1812_vm5, %v3251_v49 }
 0x3b2   :  { %5066 = vmatmul.mubr.msk.f32.vlgmr.msra.gmra.mrb[24].mxu0 %vm1812_vm5, %v3252_v1  ;;  %v3254_v23 = vsub.f32 %v3230_v2, %v6207_v54 }
 0x3b3   :  { %v3253_v52 = vsub.f32 %v3229_v51, %v6215_v18 }
 0x3b5   :  { %5068 = vmatprep.mubr.msk.f32.mxu0 %vm1812_vm5, %v3253_v52 }
 0x3b6   :  { %5069 = vmatmul.mubr.msk.f32.gmra.mrb[26].mxu0 %vm1812_vm5, %v3254_v23 }
 0x3bb   :  { %v4993_v44 = vpop.f32.mrb[28].mxu1 }
 0x3bc   :  { %v3232_v55 = vmul.f32 2.0, %v4993_v44  ;;  %v2543_v56 = vpop.f32.mrb[29].mxu1 }
 0x3bd   :  { %v3231_v58 = vmul.f32 2.0, %v2543_v56 }
 0x3be   :  { %v3256_v63 = vsub.f32 %v3232_v55, %v6244_v38 }
 0x3bf   :  { %v3255_v19 = vsub.f32 %v3231_v58, %v6242_v34  ;;  %v5000_v41 = vpop.f32.mrb[30].mxu1 }
 0x3c0   :  { %v3234_v32 = vmul.f32 2.0, %v5000_v41  ;;  %v2618_v6 = vpop.f32.mrb[31].mxu1 }
 0x3c1   :  { %v3233_v33 = vmul.f32 2.0, %v2618_v6  ;;  %5071 = vmatprep.mubr.msk.f32.mxu0 %vm1812_vm5, %v3255_v19 }
 0x3c2   :  { %5072 = vmatmul.mubr.msk.f32.gmra.mrb[28].mxu0 %vm1812_vm5, %v3256_v63  ;;  %v3258_v3 = vsub.f32 %v3234_v32, %v6240_v47 }
 0x3c3   :  { %v3257_v54 = vsub.f32 %v3233_v33, %v6247_v39  ;;  %v5007_v18 = vpop.f32.mrb[32].mxu1 }
 0x3c4   :  { %v3236_v7 = vmul.f32 2.0, %v5007_v18  ;;  %v2693_v22 = vpop.f32.mrb[33].mxu1  ;;  %v5513_v18 = vld [vmem:[%s7053_s6 + $0x8] sm:$0xff]  }
 0x3c5   :  { %v3235_v8 = vmul.f32 2.0, %v2693_v22  ;;  %5074 = vmatprep.mubr.msk.f32.mxu0 %vm1812_vm5, %v3257_v54  ;;  %v5512_v54 = vld [vmem:[%s7053_s6] sm:$0xff]  }
 0x3c6   :  { %5075 = vmatmul.mubr.msk.f32.gmra.mrb[30].mxu0 %vm1812_vm5, %v3258_v3  ;;  %v3260_v26 = vsub.f32 %v3236_v7, %v6262_v28  ;;  %5101 = vmatprep.subr.bf16.mxu1 %v5512_v54  ;;  %v6611_v3 = vld [vmem:[%s7054_s5] ss:$0 sm:$0xff] }
 0x3c7   :  { %v3259_v34 = vsub.f32 %v3235_v8, %v6260_v61  ;;  %v5014_v38 = vpop.f32.mrb[34].mxu1 }
 0x3c8   :  { %v3238_v4 = vmul.f32 2.0, %v5014_v38  ;;  %v2768_v10 = vpop.f32.mrb[35].mxu1 }
 0x3c9   :  { %v3237_v57 = vmul.f32 2.0, %v2768_v10  ;;  %5077 = vmatprep.mubr.msk.f32.mxu0 %vm1812_vm5, %v3259_v34 }
 0x3ca   :  { %5078 = vmatmul.mubr.msk.f32.gmra.mrb[32].mxu0 %vm1812_vm5, %v3260_v26  ;;  %v3262_v36 = vsub.f32 %v3238_v4, %v6258_v60 }
 0x3cb   :  { %v3261_v47 = vsub.f32 %v3237_v57, %v6270_v24  ;;  %v5021_v39 = vpop.f32.mrb[36].mxu1  ;;  %v5514_v57 = vld [vmem:[%s7053_s6 + $0x10] sm:$0xff]  }
 0x3cc   :  { %v3240_v59 = vmul.f32 2.0, %v5021_v39  ;;  %v2843_v43 = vpop.f32.mrb[37].mxu1 }
 0x3cd   :  { %v3239_v37 = vmul.f32 2.0, %v2843_v43  ;;  %5080 = vmatprep.mubr.msk.f32.mxu1 %vm1812_vm5, %v3261_v47 }
 0x3ce   :  { %5081 = vmatmul.mubr.msk.f32.vlgmr.msra.gmra.mrb[48].mxu1 %vm1812_vm5, %v3262_v36  ;;  %v3264_v40 = vsub.f32 %v3240_v59, %v6290_v42  ;;  %v5515_v59 = vld [vmem:[%s7053_s6 + $0x18] sm:$0xff]  }
 0x3cf   :  { %v3263_v61 = vsub.f32 %v3239_v37, %v6288_v11  ;;  %v5028_v28 = vpop.f32.mrb[38].mxu1  ;;  %5102 = vmatpush3.bf16.msra.mxu1 %v5512_v54 }
 0x3d0   :  { %v3242_v14 = vmul.f32 2.0, %v5028_v28  ;;  %v2918_v15 = vpop.f32.mrb[39].mxu1  ;;  %5103 = vmatprep.subr.bf16.mxu1 %v5513_v18 }
 0x3d1   :  { %v3241_v46 = vmul.f32 2.0, %v2918_v15  ;;  %5083 = vmatprep.mubr.msk.f32.mxu1 %vm1812_vm5, %v3263_v61  ;;  %v5516_v15 = vld [vmem:[%s7053_s6 + $0x20] sm:$0xff]  }
 0x3d2   :  { %5084 = vmatmul.mubr.msk.f32.gmra.mrb[50].mxu1 %vm1812_vm5, %v3264_v40  ;;  %v3266_v12 = vsub.f32 %v3242_v14, %v6286_v13 }
 0x3d3   :  { %v3265_v60 = vsub.f32 %v3241_v46, %v6295_v35  ;;  %v5035_v24 = vpop.f32.mrb[40].mxu1  ;;  %5104 = vmatpush3.bf16.msra.mxu1 %v5513_v18 }
 0x3d4   :  { %v3244_v17 = vmul.f32 2.0, %v5035_v24  ;;  %v2993_v0 = vpop.f32.mrb[41].mxu1  ;;  %5105 = vmatprep.subr.bf16.mxu1 %v5514_v57 }
 0x3d5   :  { %v3243_v48 = vmul.f32 2.0, %v2993_v0  ;;  %5086 = vmatprep.mubr.msk.f32.mxu1 %vm1812_vm5, %v3265_v60 }
 0x3d6   :  { %5087 = vmatmul.mubr.msk.f32.gmra.mrb[52].mxu1 %vm1812_vm5, %v3266_v12  ;;  %v3268_v31 = vsub.f32 %v3244_v17, %v6318_v50 }
 0x3d7   :  { %v3267_v11 = vsub.f32 %v3243_v48, %v6316_v16  ;;  %v5042_v42 = vpop.f32.mrb[42].mxu1  ;;  %5106 = vmatpush3.bf16.msra.mxu1 %v5514_v57 }
 0x3d8   :  { %v3246_v62 = vmul.f32 2.0, %v5042_v42  ;;  %v3068_v25 = vpop.f32.mrb[43].mxu1  ;;  %5107 = vmatprep.subr.bf16.mxu1 %v5515_v59 }
 0x3d9   :  { %v3245_v45 = vmul.f32 2.0, %v3068_v25  ;;  %5089 = vmatprep.mubr.msk.f32.mxu1 %vm1812_vm5, %v3267_v11  ;;  %v5517_v11 = vld [vmem:[%s7053_s6 + $0x28] sm:$0xff]  }
 0x3da   :  { %5090 = vmatmul.mubr.msk.f32.gmra.mrb[54].mxu1 %vm1812_vm5, %v3268_v31  ;;  %v3270_v49 = vsub.f32 %v3246_v62, %v6314_v53 }
 0x3db   :  { %v3269_v13 = vsub.f32 %v3245_v45, %v6324_v20  ;;  %v5049_v35 = vpop.f32.mrb[44].mxu1  ;;  %5108 = vmatpush3.bf16.msra.mxu1 %v5515_v59 }
 0x3dc   :  { %v3248_v29 = vmul.f32 2.0, %v5049_v35  ;;  %v3143_v1 = vpop.f32.mrb[45].mxu1  ;;  %5109 = vmatprep.subr.bf16.mxu1 %v5516_v15 }
 0x3dd   :  { %v3247_v2 = vmul.f32 2.0, %v3143_v1  ;;  %5092 = vmatprep.mubr.msk.f32.mxu1 %vm1812_vm5, %v3269_v13 }
 0x3de   :  { %5093 = vmatmul.mubr.msk.f32.gmra.mrb[56].mxu1 %vm1812_vm5, %v3270_v49  ;;  %v3272_v50 = vsub.f32 %v3248_v29, %v6338_v21 }
 0x3df   :  { %v3271_v16 = vsub.f32 %v3247_v2, %v6336_v9  ;;  %5110 = vmatpush3.bf16.msra.mxu1 %v5516_v15 }
 0x3e0   :  { %5111 = vmatprep.subr.bf16.mxu1 %v5517_v11 }
 0x3e1   :  { %v5056_v30 = vpop.f32.mrb[46].mxu1  ;;  %5095 = vmatprep.mubr.msk.f32.mxu1 %vm1812_vm5, %v3271_v16 }
 0x3e2   :  { %v3250_v51 = vmul.f32 2.0, %v5056_v30  ;;  %v3218_v52 = vpop.f32.mrb[47].mxu1  ;;  %5096 = vmatmul.mubr.msk.f32.gmra.mrb[58].mxu1 %vm1812_vm5, %v3272_v50 }
 0x3e3   :  { %v3249_v20 = vmul.f32 2.0, %v3218_v52  ;;  %5112 = vmatpush3.bf16.msra.mxu1 %v5517_v11 }
 0x3e4   :  { %v3274_v23 = vsub.f32 %v3250_v51, %v6354_v27 }
 0x3e5   :  { %v3273_v53 = vsub.f32 %v3249_v20, %v6352_v5 }
 0x3e7   :  { %5098 = vmatprep.mubr.msk.f32.mxu1 %vm1812_vm5, %v3273_v53 }
 0x3e8   :  { %5099 = vmatmul.mubr.msk.f32.gmra.mrb[60].mxu1 %vm1812_vm5, %v3274_v23 }
 0x3f4   :  { %v6574_v44 = vpop.f32.mrb[34].mxu0 }
 0x3f5   :  { %v6576_v9 = vpop.f32.mrb[35].mxu0 }
 0x3f8   :  { %v6578_v21 = vpop.f32.mrb[36].mxu0 }
 0x3f9   :  { %v6580_v55 = vpop.f32.mrb[37].mxu0 }
 0x3fc   :  { %v6582_v56 = vpop.f32.mrb[38].mxu0 }
 0x3fd   :  { %v6584_v58 = vpop.f32.mrb[39].mxu0 }
 0x400   :  { %v6586_v19 = vpop.f32.mrb[40].mxu0 }
 0x401   :  { %v6588_v5 = vpop.f32.mrb[41].mxu0 }
 0x404   :  { %v6590_v27 = vpop.f32.mrb[42].mxu0 }
 0x405   :  { %v6592_v41 = vpop.f32.mrb[43].mxu0 }
 0x408   :  { %v6594_v63 = vpop.f32.mrb[44].mxu0 }
 0x409   :  { %v6596_v32 = vpop.f32.mrb[45].mxu0 }
 0x40c   :  { %v6598_v6 = vpop.f32.mrb[46].mxu0 }
 0x40d   :  { %v6600_v33 = vpop.f32.mrb[47].mxu0 }
 0x485   :  { %v5067_v7 = vpop.f32.mrb[24].mxu0 }
 0x486   :  { %v6614_v22 = vadd.f32 %v5067_v7, %v6611_v3  ;;  %v3418_v8 = vpop.f32.mrb[25].mxu0 }
 0x487   :  { %v6617_v34 = vadd.f32 %v6611_v3, %v3418_v8 }
 0x489   :  { %v5070_v38 = vpop.f32.mrb[26].mxu0 }
 0x48a   :  { %v6620_v26 = vadd.f32 %v5070_v38, %v6611_v3  ;;  %v3428_v4 = vpop.f32.mrb[27].mxu0 }
 0x48b   :  { %v6623_v10 = vadd.f32 %v6611_v3, %v3428_v4 }
 0x495   :  { %v5073_v47 = vpop.f32.mrb[28].mxu0 }
 0x496   :  { %v6629_v39 = vadd.f32 %v5073_v47, %v6611_v3  ;;  %v3438_v36 = vpop.f32.mrb[29].mxu0 }
 0x497   :  { %v6635_v43 = vadd.f32 %v6611_v3, %v3438_v36 }
 0x498   :  { %v3597_v37 = vmax.f32 %v6629_v39, 0.0 }
 0x499   :  { %v3596_v61 = vmax.f32 %v6635_v43, 0.0  ;;  %v5076_v28 = vpop.f32.mrb[30].mxu0 }
 0x49a   :  { %v6640_v40 = vadd.f32 %v5076_v28, %v6611_v3  ;;  %v3448_v14 = vpop.f32.mrb[31].mxu0 }
 0x49b   :  { %v5429_v46 = vpack.i.bf16 %v3597_v37, %v3596_v61  ;;  %v6650_v60 = vadd.f32 %v6611_v3, %v3448_v14 }
 0x49c   :  { %v3599_v24 = vmax.f32 %v6640_v40, 0.0 }
 0x49d   :  { %v3598_v12 = vmax.f32 %v6650_v60, 0.0  ;;  %5430 = vrot.lane.b32.xlu0 %v5429_v46, %s5686_s29  ;;  %v5079_v17 = vpop.f32.mrb[32].mxu0 }
 0x49e   :  { %v6656_v0 = vadd.f32 %v5079_v17, %v6611_v3  ;;  %v3458_v48 = vpop.f32.mrb[33].mxu0 }
 0x49f   :  { %v5434_v42 = vpack.i.bf16 %v3599_v24, %v3598_v12  ;;  %v6666_v31 = vadd.f32 %v6611_v3, %v3458_v48 }
 0x4a0   :  { %v3601_v62 = vmax.f32 %v6656_v0, 0.0 }
 0x4a1   :  { %v3600_v25 = vmax.f32 %v6666_v31, 0.0  ;;  %v5082_v45 = vpop.f32.mrb[48].mxu1  ;;  %5435 = vrot.lane.b32.xlu1 %v5434_v42, %s5686_s29 }
 0x4a2   :  { %v5253_v13 = vadd.f32 %v5082_v45, %v6574_v44  ;;  %v3468_v35 = vpop.f32.mrb[49].mxu1 }
 0x4a3   :  { %v5254_v49 = vadd.f32 %v3468_v35, %v6576_v9  ;;  %v5439_v29 = vpack.i.bf16 %v3601_v62, %v3600_v25 }
 0x4a4   :  { %v6678_v1 = vadd.f32 %v5253_v13, %v6611_v3 }
 0x4a5   :  { %v6681_v2 = vadd.f32 %v5254_v49, %v6611_v3  ;;  %v5085_v16 = vpop.f32.mrb[50].mxu1  ;;  %5440 = vrot.lane.b32.xlu0 %v5439_v29, %s5684_s22 }
 0x4a6   :  { %v3603_v50 = vmax.f32 %v6678_v1, 0.0  ;;  %v5255_v30 = vadd.f32 %v5085_v16, %v6578_v21  ;;  %v3478_v51 = vpop.f32.mrb[51].mxu1 }
 0x4a7   :  { %v3602_v52 = vmax.f32 %v6681_v2, 0.0  ;;  %v5256_v20 = vadd.f32 %v3478_v51, %v6580_v55 }
 0x4a8   :  { %v6689_v53 = vadd.f32 %v5255_v30, %v6611_v3 }
 0x4a9   :  { %v6692_v23 = vadd.f32 %v5256_v20, %v6611_v3  ;;  %v5088_v44 = vpop.f32.mrb[52].mxu1  ;;  %5445 = vrot.lane.b32.xlu0 %v5439_v29, %s5686_s29  ;;  %v5449_v9 = vpack.i.bf16 %v3603_v50, %v3602_v52 }
 0x4aa   :  { %v3605_v21 = vmax.f32 %v6689_v53, 0.0  ;;  %v5257_v54 = vadd.f32 %v5088_v44, %v6582_v56  ;;  %v3488_v18 = vpop.f32.mrb[53].mxu1 }
 0x4ab   :  { %v3604_v55 = vmax.f32 %v6692_v23, 0.0  ;;  %v5258_v7 = vadd.f32 %v3488_v18, %v6584_v58  ;;  %5450 = vrot.lane.b32.xlu1 %v5449_v9, %s5684_s22 }
 0x4ac   :  { %v6705_v8 = vadd.f32 %v5257_v54, %v6611_v3 }
 0x4ad   :  { %v6708_v38 = vadd.f32 %v5258_v7, %v6611_v3  ;;  %v5091_v4 = vpop.f32.mrb[54].mxu1  ;;  %v5459_v57 = vpack.i.bf16 %v3605_v21, %v3604_v55 }
 0x4ae   :  { %v3607_v56 = vmax.f32 %v6705_v8, 0.0  ;;  %v5259_v47 = vadd.f32 %v5091_v4, %v6586_v19  ;;  %v3498_v36 = vpop.f32.mrb[55].mxu1 }
 0x4af   :  { %v3606_v58 = vmax.f32 %v6708_v38, 0.0  ;;  %v5260_v59 = vadd.f32 %v3498_v36, %v6588_v5  ;;  %5455 = vrot.lane.b32.xlu1 %v5449_v9, %s5686_s29  ;;  %5460 = vrot.lane.b32.xlu0 %v5459_v57, %s5684_s22 }
 0x4b0   :  { %v3585_v28 = vadd.f32 %v5259_v47, %v6611_v3 }
 0x4b1   :  { %v3584_v14 = vadd.f32 %v5260_v59, %v6611_v3  ;;  %v5094_v15 = vpop.f32.mrb[56].mxu1  ;;  %v5469_v46 = vpack.i.bf16 %v3607_v56, %v3606_v58 }
 0x4b2   :  { %v3609_v19 = vmax.f32 %v3585_v28, 0.0  ;;  %v5261_v17 = vadd.f32 %v5094_v15, %v6590_v27  ;;  %v3508_v48 = vpop.f32.mrb[57].mxu1  ;;  %v3593_v15 = vmax.f32 %v6614_v22, 0.0 }
 0x4b3   :  { %v3608_v11 = vmax.f32 %v3584_v14, 0.0  ;;  %v5262_v5 = vadd.f32 %v3508_v48, %v6592_v41  ;;  %5470 = vrot.lane.b32.xlu1 %v5469_v46, %s5684_s22  ;;  %5465 = vrot.lane.b32.xlu0 %v5459_v57, %s5686_s29 }
 0x4b4   :  { %v3587_v42 = vadd.f32 %v5261_v17, %v6611_v3 }
 0x4b5   :  { %v3586_v45 = vadd.f32 %v5262_v5, %v6611_v3  ;;  %v5097_v13 = vpop.f32.mrb[58].mxu1  ;;  %v5479_v35 = vpack.i.bf16 %v3609_v19, %v3608_v11 }
 0x4b6   :  { %v3611_v49 = vmax.f32 %v3587_v42, 0.0  ;;  %v5263_v29 = vadd.f32 %v5097_v13, %v6594_v63  ;;  %v3518_v16 = vpop.f32.mrb[59].mxu1 }
 0x4b7   :  { %v3610_v30 = vmax.f32 %v3586_v45, 0.0  ;;  %v5264_v27 = vadd.f32 %v3518_v16, %v6596_v32  ;;  %5475 = vrot.lane.b32.xlu1 %v5469_v46, %s5686_s29  ;;  %5480 = vrot.lane.b32.xlu0 %v5479_v35, %s5684_s22 }
 0x4b8   :  { %v3589_v41 = vadd.f32 %v5263_v29, %v6611_v3 }
 0x4b9   :  { %v3588_v51 = vadd.f32 %v5264_v27, %v6611_v3  ;;  %v5489_v20 = vpack.i.bf16 %v3611_v49, %v3610_v30  ;;  %v3594_v49 = vmax.f32 %v6623_v10, 0.0 }
 0x4ba   :  { %v3613_v44 = vmax.f32 %v3589_v41, 0.0 }
 0x4bb   :  { %v3612_v9 = vmax.f32 %v3588_v51, 0.0  ;;  %v5100_v54 = vpop.f32.mrb[60].mxu1  ;;  %5490 = vrot.lane.b32.xlu1 %v5489_v20, %s5684_s22  ;;  %5485 = vrot.lane.b32.xlu0 %v5479_v35, %s5686_s29 }
 0x4bc   :  { %v5265_v63 = vadd.f32 %v5100_v54, %v6598_v6  ;;  %v3528_v18 = vpop.f32.mrb[61].mxu1 }
 0x4bd   :  { %v5266_v32 = vadd.f32 %v3528_v18, %v6600_v33  ;;  %v5499_v7 = vpack.i.bf16 %v3613_v44, %v3612_v9  ;;  %v3592_v33 = vmax.f32 %v6617_v34, 0.0  ;;  %v3595_v34 = vmax.f32 %v6620_v26, 0.0 }
 0x4be   :  { %v3591_v4 = vadd.f32 %v5265_v63, %v6611_v3 }
 0x4bf   :  { %v3590_v57 = vadd.f32 %v5266_v32, %v6611_v3  ;;  %5495 = vrot.lane.b32.xlu1 %v5489_v20, %s5686_s29  ;;  %5500 = vrot.lane.b32.xlu0 %v5499_v7, %s5684_s22 }
 0x4c0   :  { %v3615_v47 = vmax.f32 %v3591_v4, 0.0 }
 0x4c1   :  { %v3614_v36 = vmax.f32 %v3590_v57, 0.0 }
 0x4c3   :  { %v5504_v59 = vpack.i.bf16 %v3615_v47, %v3614_v36 }
 0x4c5   :  { %5505 = vrot.lane.b32.xlu1 %v5504_v59, %s5684_s22 }
 0x50f   :  { %v5431_v28 = vpop.permute.xlu0 %5430 }
 0x510   :  { %v5433_v14 = vunpack.i.h.bf16 %v5431_v28  ;;  %v5432_v6 = vunpack.i.l.bf16 %v5431_v28 }
 0x512   :  { %v3733_v48 = vsel %vm1812_vm5, %v3593_v15, %v5433_v14  ;;  %v3732_v11 = vsel %vm1812_vm5, %v3592_v33, %v5432_v6 }
 0x513   :  { %v5436_v19 = vpop.permute.xlu1 %5435 }
 0x514   :  { %v5438_v45 = vunpack.i.h.bf16 %v5436_v19  ;;  %v5437_v13 = vunpack.i.l.bf16 %v5436_v19 }
 0x516   :  { %v3735_v27 = vsel %vm1812_vm5, %v3595_v34, %v5438_v45  ;;  %v3734_v41 = vsel %vm1812_vm5, %v3594_v49, %v5437_v13 }
 0x517   :  { %v5441_v46 = vpop.permute.xlu0 %5440 }
 0x518   :  { %v5443_v3 = vunpack.i.h.bf16 %v5441_v46  ;;  %v5442_v17 = vunpack.i.l.bf16 %v5441_v46 }
 0x51a   :  { %v3750_v5 = vsel %vm3748_vm6, %v3733_v48, %v5443_v3  ;;  %v3749_v42 = vsel %vm3748_vm6, %v3732_v11, %v5442_v17 }
 0x51b   :  { %v3765_v35 = vpack.c.bf16 %v3750_v5, %v3749_v42  ;;  %v5446_v22 = vpop.permute.xlu0 %5445 }
 0x51c   :  { %v5448_v51 = vunpack.i.h.bf16 %v5446_v22  ;;  %v5447_v20 = vunpack.i.l.bf16 %v5446_v22 }
 0x51d   :  { %v5451_v29 = vpop.permute.xlu1 %5450  ;;  %5113 = vmatprep.mubr.msk.bf16.mxu1 %vm3828_vm7, %v3765_v35 }
 0x51e   :  { %v5453_v16 = vunpack.i.h.bf16 %v5451_v29  ;;  %v5452_v30 = vunpack.i.l.bf16 %v5451_v29  ;;  %v3737_v32 = vsel %vm1812_vm5, %v3597_v37, %v5448_v51  ;;  %v3736_v7 = vsel %vm1812_vm5, %v3596_v61, %v5447_v20 }
 0x520   :  { %v3751_v44 = vsel %vm3748_vm6, %v3734_v41, %v5452_v30  ;;  %v3752_v9 = vsel %vm3748_vm6, %v3735_v27, %v5453_v16 }
 0x521   :  { %v3766_v54 = vpack.c.bf16 %v3752_v9, %v3751_v44  ;;  %v5456_v63 = vpop.permute.xlu1 %5455  ;;  %v5461_v26 = vpop.permute.xlu0 %5460 }
 0x522   :  { %v5463_v18 = vunpack.i.h.bf16 %v5461_v26  ;;  %v5462_v10 = vunpack.i.l.bf16 %v5461_v26  ;;  %v5458_v4 = vunpack.i.h.bf16 %v5456_v63  ;;  %v5457_v57 = vunpack.i.l.bf16 %v5456_v63 }
 0x523   :  { %5114 = vmatmul.mubr.msk.bf16.vlgmr.msra.gmra.mrb[64].mxu1 %vm3828_vm7, %v3766_v54 }
 0x524   :  { %v3753_v47 = vsel %vm3748_vm6, %v3736_v7, %v5462_v10  ;;  %v3754_v36 = vsel %vm3748_vm6, %v3737_v32, %v5463_v18  ;;  %v3739_v39 = vsel %vm1812_vm5, %v3599_v24, %v5458_v4  ;;  %v3738_v43 = vsel %vm1812_vm5, %v3598_v12, %v5457_v57  ;;  %v6818_v10 = vld [vmem:[%s7055_s7] ss:$0 sm:$0xff]  ;;  %s5687_s7 = smov 112  }
 0x525   :  { %v3767_v59 = vpack.c.bf16 %v3754_v36, %v3753_v47  ;;  %v5471_v28 = vpop.permute.xlu1 %5470  ;;  %v5466_v14 = vpop.permute.xlu0 %5465 }
 0x526   :  { %v5473_v6 = vunpack.i.h.bf16 %v5471_v28  ;;  %v5472_v15 = vunpack.i.l.bf16 %v5471_v28  ;;  %v5468_v37 = vunpack.i.h.bf16 %v5466_v14  ;;  %v5467_v61 = vunpack.i.l.bf16 %v5466_v14 }
 0x527   :  { %5117 = vmatprep.mubr.msk.bf16.mxu1 %vm3828_vm7, %v3767_v59 }
 0x528   :  { %v3755_v33 = vsel %vm3748_vm6, %v3738_v43, %v5472_v15  ;;  %v3756_v46 = vsel %vm3748_vm6, %v3739_v39, %v5473_v6  ;;  %v3741_v40 = vsel %vm1812_vm5, %v3601_v62, %v5468_v37  ;;  %v3740_v60 = vsel %vm1812_vm5, %v3600_v25, %v5467_v61 }
 0x529   :  { %v3768_v19 = vpack.c.bf16 %v3756_v46, %v3755_v33  ;;  %v5476_v3 = vpop.permute.xlu1 %5475  ;;  %v5481_v17 = vpop.permute.xlu0 %5480 }
 0x52a   :  { %v5483_v48 = vunpack.i.h.bf16 %v5481_v17  ;;  %v5482_v11 = vunpack.i.l.bf16 %v5481_v17  ;;  %v5478_v24 = vunpack.i.h.bf16 %v5476_v3  ;;  %v5477_v12 = vunpack.i.l.bf16 %v5476_v3 }
 0x52b   :  { %5118 = vmatmul.mubr.msk.bf16.gmra.mrb[68].mxu1 %vm3828_vm7, %v3768_v19 }
 0x52c   :  { %v3757_v5 = vsel %vm3748_vm6, %v3740_v60, %v5482_v11  ;;  %v3758_v42 = vsel %vm3748_vm6, %v3741_v40, %v5483_v48  ;;  %v3743_v0 = vsel %vm1812_vm5, %v3603_v50, %v5478_v24  ;;  %v3742_v31 = vsel %vm1812_vm5, %v3602_v52, %v5477_v12 }
 0x52d   :  { %v3769_v45 = vpack.c.bf16 %v3758_v42, %v3757_v5  ;;  %v5491_v13 = vpop.permute.xlu1 %5490  ;;  %v5486_v35 = vpop.permute.xlu0 %5485 }
 0x52e   :  { %v5493_v22 = vunpack.i.h.bf16 %v5491_v13  ;;  %v5492_v34 = vunpack.i.l.bf16 %v5491_v13  ;;  %v5488_v62 = vunpack.i.h.bf16 %v5486_v35  ;;  %v5487_v25 = vunpack.i.l.bf16 %v5486_v35 }
 0x52f   :  { %5121 = vmatprep.mubr.msk.bf16.mxu1 %vm3828_vm7, %v3769_v45 }
 0x530   :  { %v3759_v49 = vsel %vm3748_vm6, %v3742_v31, %v5492_v34  ;;  %v3760_v29 = vsel %vm3748_vm6, %v3743_v0, %v5493_v22  ;;  %v3745_v1 = vsel %vm1812_vm5, %v3605_v21, %v5488_v62  ;;  %v3744_v2 = vsel %vm1812_vm5, %v3604_v55, %v5487_v25 }
 0x531   :  { %v3770_v16 = vpack.c.bf16 %v3760_v29, %v3759_v49  ;;  %v5501_v30 = vpop.permute.xlu0 %5500  ;;  %v5496_v27 = vpop.permute.xlu1 %5495 }
 0x532   :  { %v5503_v41 = vunpack.i.h.bf16 %v5501_v30  ;;  %v5502_v51 = vunpack.i.l.bf16 %v5501_v30  ;;  %v5498_v20 = vunpack.i.h.bf16 %v5496_v27  ;;  %v5497_v44 = vunpack.i.l.bf16 %v5496_v27 }
 0x533   :  { %5122 = vmatmul.mubr.msk.bf16.gmra.mrb[72].mxu1 %vm3828_vm7, %v3770_v16 }
 0x534   :  { %v3761_v50 = vsel %vm3748_vm6, %v3744_v2, %v5502_v51  ;;  %v3762_v52 = vsel %vm3748_vm6, %v3745_v1, %v5503_v41  ;;  %v3747_v23 = vsel %vm1812_vm5, %v3607_v56, %v5498_v20  ;;  %v3746_v21 = vsel %vm1812_vm5, %v3606_v58, %v5497_v44 }
 0x535   :  { %v3771_v9 = vpack.c.bf16 %v3762_v52, %v3761_v50 }
 0x537   :  { %v5506_v54 = vpop.permute.xlu1 %5505  ;;  %5125 = vmatprep.mubr.msk.bf16.mxu1 %vm3828_vm7, %v3771_v9 }
 0x538   :  { %v5508_v63 = vunpack.i.h.bf16 %v5506_v54  ;;  %v5507_v53 = vunpack.i.l.bf16 %v5506_v54 }
 0x53a   :  { %v3763_v55 = vsel %vm3748_vm6, %v3746_v21, %v5507_v53  ;;  %v3764_v26 = vsel %vm3748_vm6, %v3747_v23, %v5508_v63 }
 0x53b   :  { %v3772_v18 = vpack.c.bf16 %v3764_v26, %v3763_v55 }
 0x53d   :  { %5126 = vmatmul.mubr.msk.bf16.gmra.mrb[76].mxu1 %vm3828_vm7, %v3772_v18 }
 0x5f6   :  { %v5115_v32 = vpop.f32.mrb[64].mxu1 }
 0x5f7   :  { %v6821_v8 = vadd.f32 %v5115_v32, %v6818_v10  ;;  %v3887_v56 = vpop.f32.mrb[65].mxu1 }
 0x5f8   :  { %v6824_v38 = vadd.f32 %v6818_v10, %v3887_v56  ;;  %v5116_v58 = vpop.f32.mrb[66].mxu1 }
 0x5f9   :  { %v4554_v7 = vmul.f32 -1.442695, %v6821_v8  ;;  %v6828_v4 = vadd.f32 %v5116_v58, %v6818_v10  ;;  %4146 = vrot.lane.b32.xlu0 %v6821_v8, %s5685_s2  ;;  %v3890_v57 = vpop.f32.mrb[67].mxu1 }
 0x5fa   :  { %v6833_v47 = vadd.f32 %v6818_v10, %v3890_v57  ;;  %v4552_v59 = vmul.f32 -1.442695, %v6824_v38 }
 0x5fb   :  { %v4555_v36 = vmul.f32 -1.442695, %v6828_v4  ;;  %4148 = vrot.lane.b32.xlu1 %v6828_v4, %s5685_s2  ;;  %5614 = vpow2.f32 %v4554_v7 }
 0x5fc   :  { %v4553_v28 = vmul.f32 -1.442695, %v6833_v47 }
 0x5fd   :  { %4142 = vrot.lane.b32.xlu0 %v6824_v38, %s5685_s2  ;;  %5616 = vpow2.f32 %v4555_v36 }
 0x5fe   :  { %v5119_v14 = vpop.f32.mrb[68].mxu1  ;;  %5618 = vpow2.f32 %v4552_v59 }
 0x5ff   :  { %v6843_v6 = vadd.f32 %v5119_v14, %v6818_v10  ;;  %v3903_v15 = vpop.f32.mrb[69].mxu1  ;;  %4144 = vrot.lane.b32.xlu1 %v6833_v47, %s5685_s2  ;;  %5620 = vpow2.f32 %v4553_v28 }
 0x600   :  { %v6848_v39 = vadd.f32 %v6818_v10, %v3903_v15  ;;  %v5120_v43 = vpop.f32.mrb[70].mxu1 }
 0x601   :  { %v4558_v37 = vmul.f32 -1.442695, %v6843_v6  ;;  %v6852_v61 = vadd.f32 %v5120_v43, %v6818_v10  ;;  %v3906_v33 = vpop.f32.mrb[71].mxu1  ;;  %4154 = vrot.lane.b32.xlu0 %v6843_v6, %s5685_s2 }
 0x602   :  { %v6857_v46 = vadd.f32 %v6818_v10, %v3906_v33  ;;  %v4556_v3 = vmul.f32 -1.442695, %v6848_v39 }
 0x603   :  { %5622 = vpow2.f32 %v4558_v37  ;;  %v4559_v19 = vmul.f32 -1.442695, %v6852_v61  ;;  %4156 = vrot.lane.b32.xlu1 %v6852_v61, %s5685_s2 }
 0x604   :  { %v4557_v48 = vmul.f32 -1.442695, %v6857_v46 }
 0x605   :  { %5624 = vpow2.f32 %v4559_v19  ;;  %4150 = vrot.lane.b32.xlu0 %v6848_v39, %s5685_s2  ;;  %v5615_v17 = vpop.eup %5614 }
 0x606   :  { %v5123_v11 = vpop.f32.mrb[72].mxu1  ;;  %5626 = vpow2.f32 %v4556_v3  ;;  %v4000_v42 = vadd.f32 1.0, %v5615_v17 }
 0x607   :  { %v6867_v40 = vadd.f32 %v5123_v11, %v6818_v10  ;;  %v3919_v60 = vpop.f32.mrb[73].mxu1  ;;  %4152 = vrot.lane.b32.xlu1 %v6857_v46, %s5685_s2  ;;  %v5617_v24 = vpop.eup %5616  ;;  %5628 = vpow2.f32 %v4557_v48 }
 0x608   :  { %v6872_v12 = vadd.f32 %v6818_v10, %v3919_v60  ;;  %v5124_v5 = vpop.f32.mrb[74].mxu1  ;;  %v5619_v22 = vpop.eup %5618  ;;  %v4001_v0 = vadd.f32 1.0, %v5617_v24 }
 0x609   :  { %v4562_v45 = vmul.f32 -1.442695, %v6867_v40  ;;  %v6876_v13 = vadd.f32 %v5124_v5, %v6818_v10  ;;  %v3922_v35 = vpop.f32.mrb[75].mxu1  ;;  %4162 = vrot.lane.b32.xlu0 %v6867_v40, %s5685_s2  ;;  %v5621_v62 = vpop.eup %5620  ;;  %v3998_v29 = vadd.f32 1.0, %v5619_v22 }
 0x60a   :  { %v6881_v34 = vadd.f32 %v6818_v10, %v3922_v35  ;;  %v4560_v25 = vmul.f32 -1.442695, %v6872_v12  ;;  %v3999_v27 = vadd.f32 1.0, %v5621_v62 }
 0x60b   :  { %v4563_v31 = vmul.f32 -1.442695, %v6876_v13  ;;  %4164 = vrot.lane.b32.xlu1 %v6876_v13, %s5685_s2  ;;  %5630 = vpow2.f32 %v4562_v45 }
 0x60c   :  { %5632 = vrcp.f32 %v4000_v42  ;;  %v4561_v16 = vmul.f32 -1.442695, %v6881_v34 }
 0x60d   :  { %v5623_v49 = vpop.eup %5622  ;;  %4158 = vrot.lane.b32.xlu0 %v6872_v12, %s5685_s2  ;;  %5634 = vpow2.f32 %v4563_v31 }
 0x60e   :  { %5636 = vrcp.f32 %v4001_v0  ;;  %v4004_v41 = vadd.f32 1.0, %v5623_v49 }
 0x60f   :  { %v5625_v30 = vpop.eup %5624  ;;  %4160 = vrot.lane.b32.xlu1 %v6881_v34, %s5685_s2  ;;  %5638 = vpow2.f32 %v4560_v25 }
 0x610   :  { %v5127_v51 = vpop.f32.mrb[76].mxu1  ;;  %5640 = vrcp.f32 %v3998_v29  ;;  %v5627_v50 = vpop.eup %5626  ;;  %v4005_v52 = vadd.f32 1.0, %v5625_v30 }
 0x611   :  { %v6893_v1 = vadd.f32 %v5127_v51, %v6818_v10  ;;  %v3935_v2 = vpop.f32.mrb[77].mxu1  ;;  %5642 = vpow2.f32 %v4561_v16  ;;  %v5629_v53 = vpop.eup %5628  ;;  %v4002_v55 = vadd.f32 1.0, %v5627_v50 }
 0x612   :  { %v6896_v20 = vadd.f32 %v6818_v10, %v3935_v2  ;;  %v5128_v44 = vpop.f32.mrb[78].mxu1  ;;  %5644 = vrcp.f32 %v3999_v27  ;;  %v4003_v58 = vadd.f32 1.0, %v5629_v53 }
 0x613   :  { %v4566_v9 = vmul.f32 -1.442695, %v6893_v1  ;;  %v6900_v54 = vadd.f32 %v5128_v44, %v6818_v10  ;;  %v3938_v63 = vpop.f32.mrb[79].mxu1  ;;  %5646 = vrcp.f32 %v4004_v41 }
 0x614   :  { %v4564_v23 = vmul.f32 -1.442695, %v6896_v20  ;;  %v6904_v21 = vadd.f32 %v6818_v10, %v3938_v63  ;;  %4166 = vrot.lane.b32.xlu0 %v6896_v20, %s5685_s2 }
 0x615   :  { %5648 = vpow2.f32 %v4566_v9  ;;  %v4567_v26 = vmul.f32 -1.442695, %v6900_v54  ;;  %v5631_v18 = vpop.eup %5630 }
 0x616   :  { %5650 = vrcp.f32 %v4005_v52  ;;  %v4565_v32 = vmul.f32 -1.442695, %v6904_v21  ;;  %4168 = vrot.lane.b32.xlu1 %v6904_v21, %s5685_s2  ;;  %v5633_v56 = vpop.eup %5632  ;;  %v4008_v57 = vadd.f32 1.0, %v5631_v18 }
 0x617   :  { %5652 = vpow2.f32 %v4567_v26  ;;  %v5635_v7 = vpop.eup %5634 }
 0x618   :  { %5654 = vpow2.f32 %v4564_v23  ;;  %4066 = vrot.lane.b32.xlu0 %v5633_v56, %s5687_s7  ;;  %v5637_v10 = vpop.eup %5636  ;;  %v4009_v28 = vadd.f32 1.0, %v5635_v7 }
 0x619   :  { %5656 = vrcp.f32 %v4002_v55  ;;  %v5639_v36 = vpop.eup %5638 }
 0x61a   :  { %5658 = vpow2.f32 %v4565_v32  ;;  %4068 = vrot.lane.b32.xlu1 %v5637_v10, %s5687_s7  ;;  %v5641_v59 = vpop.eup %5640  ;;  %v4006_v43 = vadd.f32 1.0, %v5639_v36 }
 0x61b   :  { %5660 = vrcp.f32 %v4003_v58  ;;  %v5643_v14 = vpop.eup %5642 }
 0x61c   :  { %4062 = vrot.lane.b32.xlu0 %v5641_v59, %s5687_s7  ;;  %v5645_v15 = vpop.eup %5644  ;;  %5662 = vrcp.f32 %v4008_v57  ;;  %v4007_v19 = vadd.f32 1.0, %v5643_v14 }
 0x61d   :  { %v5647_v37 = vpop.eup %5646  ;;  %5664 = vrcp.f32 %v4009_v28 }
 0x61e   :  { %4064 = vrot.lane.b32.xlu1 %v5645_v15, %s5687_s7  ;;  %5666 = vrcp.f32 %v4006_v43 }
 0x61f   :  { %v5649_v33 = vpop.eup %5648  ;;  %5668 = vrcp.f32 %v4007_v19 }
 0x620   :  { %v5651_v3 = vpop.eup %5650  ;;  %4074 = vrot.lane.b32.xlu0 %v5647_v37, %s5687_s7  ;;  %v4012_v48 = vadd.f32 1.0, %v5649_v33 }
 0x621   :  { %v5653_v17 = vpop.eup %5652 }
 0x622   :  { %v5655_v11 = vpop.eup %5654  ;;  %4076 = vrot.lane.b32.xlu1 %v5651_v3, %s5687_s7  ;;  %v4013_v24 = vadd.f32 1.0, %v5653_v17  ;;  %5670 = vrcp.f32 %v4012_v48 }
 0x623   :  { %v5657_v60 = vpop.eup %5656  ;;  %v4010_v45 = vadd.f32 1.0, %v5655_v11 }
 0x624   :  { %v5659_v5 = vpop.eup %5658  ;;  %4070 = vrot.lane.b32.xlu0 %v5657_v60, %s5687_s7  ;;  %5672 = vrcp.f32 %v4013_v24 }
 0x625   :  { %v5661_v42 = vpop.eup %5660  ;;  %v4011_v22 = vadd.f32 1.0, %v5659_v5  ;;  %5674 = vrcp.f32 %v4010_v45 }
 0x626   :  { %4072 = vrot.lane.b32.xlu1 %v5661_v42, %s5687_s7  ;;  %v5663_v35 = vpop.eup %5662 }
 0x627   :  { %v5665_v0 = vpop.eup %5664  ;;  %5676 = vrcp.f32 %v4011_v22 }
 0x628   :  { %4082 = vrot.lane.b32.xlu0 %v5663_v35, %s5687_s7  ;;  %v5667_v31 = vpop.eup %5666 }
 0x629   :  { %v5669_v62 = vpop.eup %5668 }
 0x62a   :  { %4084 = vrot.lane.b32.xlu1 %v5665_v0, %s5687_s7 }
 0x62c   :  { %4078 = vrot.lane.b32.xlu0 %v5667_v31, %s5687_s7  ;;  %v5671_v25 = vpop.eup %5670 }
 0x62e   :  { %4080 = vrot.lane.b32.xlu1 %v5669_v62, %s5687_s7  ;;  %v5673_v49 = vpop.eup %5672 }
 0x62f   :  { %v5675_v29 = vpop.eup %5674 }
 0x630   :  { %4090 = vrot.lane.b32.xlu0 %v5671_v25, %s5687_s7 }
 0x631   :  { %v5677_v16 = vpop.eup %5676 }
 0x632   :  { %4092 = vrot.lane.b32.xlu1 %v5673_v49, %s5687_s7 }
 0x634   :  { %4086 = vrot.lane.b32.xlu0 %v5675_v29, %s5687_s7 }
 0x636   :  { %4088 = vrot.lane.b32.xlu1 %v5677_v16, %s5687_s7 }
 0x638   :  { %4170 = vrot.lane.b32.xlu0 %v6893_v1, %s5685_s2 }
 0x63a   :  { %4172 = vrot.lane.b32.xlu1 %v6900_v54, %s5685_s2 }
 0x66b   :  { %v4147_v30 = vpop.permute.xlu0 %4146 }
 0x66d   :  { %v4149_v27 = vpop.permute.xlu1 %4148 }
 0x66f   :  { %v4143_v41 = vpop.permute.xlu0 %4142 }
 0x671   :  { %v4145_v51 = vpop.permute.xlu1 %4144 }
 0x673   :  { %v4155_v2 = vpop.permute.xlu0 %4154 }
 0x675   :  { %v4157_v50 = vpop.permute.xlu1 %4156 }
 0x677   :  { %v4151_v52 = vpop.permute.xlu0 %4150 }
 0x679   :  { %v4153_v44 = vpop.permute.xlu1 %4152 }
 0x67b   :  { %v4163_v9 = vpop.permute.xlu0 %4162 }
 0x67d   :  { %v4165_v63 = vpop.permute.xlu1 %4164 }
 0x67f   :  { %v6932_v53 = vpop.permute.xlu0 %4158 }
 0x681   :  { %v6934_v23 = vpop.permute.xlu1 %4160 }
 0x686   :  { %v6936_v55 = vpop.permute.xlu0 %4166 }
 0x688   :  { %v6938_v26 = vpop.permute.xlu1 %4168 }
 0x68a   :  { %v4067_v18 = vpop.permute.xlu0 %4066 }
 0x68b   :  { %v4112_v32 = vmul.f32 %v4067_v18, %v6821_v8 }
 0x68c   :  { %v4069_v56 = vpop.permute.xlu1 %4068 }
 0x68d   :  { %v4113_v58 = vmul.f32 %v4069_v56, %v6828_v4  ;;  %v4192_v10 = vadd.f32 %v4147_v30, %v4112_v32 }
 0x68e   :  { %v4063_v7 = vpop.permute.xlu0 %4062 }
 0x68f   :  { %v4110_v57 = vmul.f32 %v4063_v7, %v6824_v38  ;;  %v4193_v36 = vadd.f32 %v4149_v27, %v4113_v58  ;;  %v4208_v43 = vmax.f32 %v4192_v10, 0.0 }
 0x690   :  { %v4065_v59 = vpop.permute.xlu1 %4064 }
 0x691   :  { %v4190_v28 = vadd.f32 %v4143_v41, %v4110_v57  ;;  %v4111_v14 = vmul.f32 %v4065_v59, %v6833_v47  ;;  %v4209_v37 = vmax.f32 %v4193_v36, 0.0  ;;  %v4254_v48 = vmul.f32 %v4208_v43, %v4208_v43 }
 0x692   :  { %v4075_v15 = vpop.permute.xlu0 %4074  ;;  %v4223_v35 = vsel %vm900_vm4, %v4208_v43, 0.0 }
 0x693   :  { %v4191_v33 = vadd.f32 %v4145_v51, %v4111_v14  ;;  %v4116_v19 = vmul.f32 %v4075_v15, %v6843_v6  ;;  %v4206_v17 = vmax.f32 %v4190_v28, 0.0  ;;  %v4255_v60 = vmul.f32 %v4209_v37, %v4209_v37 }
 0x694   :  { %v4077_v3 = vpop.permute.xlu1 %4076  ;;  %v4238_v31 = vsel %vm900_vm4, %v4209_v37, 0.0 }
 0x695   :  { %v4117_v8 = vmul.f32 %v4077_v3, %v6852_v61  ;;  %v4207_v11 = vmax.f32 %v4191_v33, 0.0  ;;  %v4196_v24 = vadd.f32 %v4155_v2, %v4116_v19  ;;  %v4222_v6 = vsel %vm900_vm4, %v4206_v17, 0.0 }
 0x696   :  { %v4071_v4 = vpop.permute.xlu0 %4070  ;;  %v4252_v22 = vmul.f32 %v4206_v17, %v4206_v17  ;;  %v4269_v61 = vsel %vm900_vm4, %v4254_v48, 0.0 }
 0x697   :  { %v4114_v38 = vmul.f32 %v4071_v4, %v6848_v39  ;;  %v4197_v42 = vadd.f32 %v4157_v50, %v4117_v8  ;;  %v4253_v62 = vmul.f32 %v4207_v11, %v4207_v11  ;;  %v4284_v39 = vsel %vm900_vm4, %v4255_v60, 0.0 }
 0x698   :  { %v4073_v5 = vpop.permute.xlu1 %4072  ;;  %v4212_v49 = vmax.f32 %v4196_v24, 0.0  ;;  %v4268_v2 = vsel %vm900_vm4, %v4252_v22, 0.0  ;;  %v4237_v50 = vsel %vm900_vm4, %v4207_v11, 0.0 }
 0x699   :  { %v4194_v47 = vadd.f32 %v4151_v52, %v4114_v38  ;;  %v4115_v45 = vmul.f32 %v4073_v5, %v6857_v46  ;;  %v4224_v46 = vadd.f32 %v4223_v35, %v4222_v6  ;;  %v4213_v27 = vmax.f32 %v4197_v42, 0.0 }
 0x69a   :  { %v4083_v0 = vpop.permute.xlu0 %4082  ;;  %v4283_v56 = vsel %vm900_vm4, %v4253_v62, 0.0  ;;  %v4258_v7 = vmul.f32 %v4212_v49, %v4212_v49  ;;  %v4270_v59 = vadd.f32 %v4269_v61, %v4268_v2  ;;  %v4239_v28 = vadd.f32 %v4238_v31, %v4237_v50 }
 0x69b   :  { %v4210_v25 = vmax.f32 %v4194_v47, 0.0  ;;  %v4195_v29 = vadd.f32 %v4153_v44, %v4115_v45  ;;  %v4120_v16 = vmul.f32 %v4083_v0, %v6867_v40  ;;  %v4259_v14 = vmul.f32 %v4213_v27, %v4213_v27 }
 0x69c   :  { %v4085_v30 = vpop.permute.xlu1 %4084  ;;  %v4227_v43 = vsel %vm900_vm4, %v4212_v49, 0.0  ;;  %v4273_v17 = vsel %vm900_vm4, %v4258_v7, 0.0  ;;  %v4242_v4 = vsel %vm900_vm4, %v4213_v27, 0.0 }
 0x69d   :  { %v4256_v41 = vmul.f32 %v4210_v25, %v4210_v25  ;;  %v4121_v51 = vmul.f32 %v4085_v30, %v6876_v13  ;;  %v4211_v52 = vmax.f32 %v4195_v29, 0.0  ;;  %v4200_v18 = vadd.f32 %v4163_v9, %v4120_v16 }
 0x69e   :  { %v4079_v32 = vpop.permute.xlu0 %4078  ;;  %v4225_v58 = vsel %vm900_vm4, %v4210_v25, 0.0  ;;  %v4285_v9 = vadd.f32 %v4284_v39, %v4283_v56  ;;  %v4288_v38 = vsel %vm900_vm4, %v4259_v14, 0.0 }
 0x69f   :  { %v4201_v44 = vadd.f32 %v4165_v63, %v4121_v51  ;;  %v4118_v40 = vmul.f32 %v4079_v32, %v6872_v12  ;;  %v4271_v10 = vsel %vm900_vm4, %v4256_v41, 0.0  ;;  %v4257_v57 = vmul.f32 %v4211_v52, %v4211_v52 }
 0x6a0   :  { %v4216_v36 = vmax.f32 %v4200_v18, 0.0  ;;  %v4081_v13 = vpop.permute.xlu1 %4080  ;;  %v4226_v37 = vadd.f32 %v4225_v58, %v4224_v46  ;;  %v4240_v33 = vsel %vm900_vm4, %v4211_v52, 0.0  ;;  %v4272_v19 = vadd.f32 %v4271_v10, %v4270_v59 }
 0x6a1   :  { %v4198_v15 = vadd.f32 %v6932_v53, %v4118_v40  ;;  %v4286_v12 = vsel %vm900_vm4, %v4257_v57, 0.0  ;;  %v4217_v3 = vmax.f32 %v4201_v44, 0.0  ;;  %v4119_v11 = vmul.f32 %v4081_v13, %v6881_v34 }
 0x6a2   :  { %v4091_v63 = vpop.permute.xlu0 %4090  ;;  %v4262_v48 = vmul.f32 %v4216_v36, %v4216_v36  ;;  %v4241_v60 = vadd.f32 %v4240_v33, %v4239_v28  ;;  %v4287_v42 = vadd.f32 %v4286_v12, %v4285_v9  ;;  %v4231_v47 = vsel %vm900_vm4, %v4216_v36, 0.0 }
 0x6a3   :  { %v4214_v8 = vmax.f32 %v4198_v15, 0.0  ;;  %v4228_v45 = vadd.f32 %v4227_v43, %v4226_v37  ;;  %v4199_v35 = vadd.f32 %v6934_v23, %v4119_v11  ;;  %v4246_v22 = vsel %vm900_vm4, %v4217_v3, 0.0 }
 0x6a4   :  { %v4093_v53 = vpop.permute.xlu1 %4092  ;;  %v4274_v0 = vadd.f32 %v4273_v17, %v4272_v19  ;;  %v4277_v31 = vsel %vm900_vm4, %v4262_v48, 0.0  ;;  %v4263_v62 = vmul.f32 %v4217_v3, %v4217_v3  ;;  %v4243_v29 = vadd.f32 %v4242_v4, %v4241_v60 }
 0x6a5   :  { %v4229_v24 = vsel %vm900_vm4, %v4214_v8, 0.0  ;;  %v4260_v5 = vmul.f32 %v4214_v8, %v4214_v8  ;;  %v4215_v39 = vmax.f32 %v4199_v35, 0.0  ;;  %v4124_v16 = vmul.f32 %v4091_v63, %v6893_v1 }
 0x6a6   :  { %v4087_v6 = vpop.permute.xlu0 %4086  ;;  %v4230_v25 = vadd.f32 %v4229_v24, %v4228_v45  ;;  %v4289_v27 = vadd.f32 %v4288_v38, %v4287_v42  ;;  %v4292_v32 = vsel %vm900_vm4, %v4263_v62, 0.0  ;;  %v5688_v42 = vmov 0  }
 0x6a7   :  { %v4275_v61 = vsel %vm900_vm4, %v4260_v5, 0.0  ;;  %v4122_v34 = vmul.f32 %v4087_v6, %v6896_v20  ;;  %v4244_v41 = vsel %vm900_vm4, %v4215_v39, 0.0  ;;  %v4261_v51 = vmul.f32 %v4215_v39, %v4215_v39  ;;  %5509 = vset.pattern.permute.xlu1 %v5688_v42  ;;  %5510 = vset.pattern.permute.xlu0 %v5688_v42 }
 0x6a8   :  { %v4089_v49 = vpop.permute.xlu1 %4088  ;;  %v4276_v46 = vadd.f32 %v4275_v61, %v4274_v0  ;;  %v4245_v20 = vadd.f32 %v4244_v41, %v4243_v29  ;;  %v4328_v41 = vld [vmem:[%s7057_s9] sm:$0xff] }
 0x6a9   :  { %v4202_v30 = vadd.f32 %v6936_v55, %v4122_v34  ;;  %v4123_v23 = vmul.f32 %v4089_v49, %v6904_v21  ;;  %v4290_v1 = vsel %vm900_vm4, %v4261_v51, 0.0  ;;  %v4125_v55 = vmul.f32 %v4093_v53, %v6900_v54  ;;  %v4321_v51 = vld [vmem:[%s7056_s8 + $0x8] sm:$0xff] }
 0x6aa   :  { %v4171_v2 = vpop.permute.xlu0 %4170  ;;  %v4232_v21 = vadd.f32 %v4231_v47, %v4230_v25  ;;  %v4291_v58 = vadd.f32 %v4290_v1, %v4289_v27  ;;  %v4247_v57 = vadd.f32 %v4246_v22, %v4245_v20  ;;  %v4278_v36 = vadd.f32 %v4277_v31, %v4276_v46 }
 0x6ab   :  { %v6980_v50 = vmax.f32 %v4202_v30, 0.0  ;;  %v4203_v52 = vadd.f32 %v6938_v26, %v4123_v23  ;;  %v4204_v18 = vadd.f32 %v4171_v2, %v4124_v16  ;;  %v4320_v23 = vld [vmem:[%s7056_s8] sm:$0xff] }
 0x6ac   :  { %v4173_v56 = vpop.permute.xlu1 %4172  ;;  %v4293_v43 = vadd.f32 %v4292_v32, %v4291_v58  ;;  %v4329_v32 = vld [vmem:[%s7057_s9 + $0x8] sm:$0xff] }
 0x6ad   :  { %v4264_v44 = vmul.f32 %v6980_v50, %v6980_v50  ;;  %v6988_v40 = vmax.f32 %v4203_v52, 0.0  ;;  %v6990_v7 = vmax.f32 %v4204_v18, 0.0  ;;  %v4205_v10 = vadd.f32 %v4173_v56, %v4125_v55 }
 0x6ae   :  { %v4233_v26 = vsel %vm900_vm4, %v6980_v50, 0.0 }
 0x6af   :  { %v4265_v13 = vmul.f32 %v6988_v40, %v6988_v40  ;;  %v4266_v54 = vmul.f32 %v6990_v7, %v6990_v7  ;;  %v4234_v59 = vadd.f32 %v4233_v26, %v4232_v21  ;;  %v4235_v28 = vsel %vm900_vm4, %v6990_v7, 0.0 }
 0x6b0   :  { %v7000_v14 = vmax.f32 %v4205_v10, 0.0  ;;  %v4248_v15 = vsel %vm900_vm4, %v6988_v40, 0.0  ;;  %v4279_v9 = vsel %vm900_vm4, %v4264_v44, 0.0 }
 0x6b1   :  { %v4236_v37 = vadd.f32 %v4235_v28, %v4234_v59  ;;  %v4249_v33 = vadd.f32 %v4248_v15, %v4247_v57  ;;  %v4280_v63 = vadd.f32 %v4279_v9, %v4278_v36  ;;  %v4281_v19 = vsel %vm900_vm4, %v4266_v54, 0.0 }
 0x6b2   :  { %v4267_v12 = vmul.f32 %v7000_v14, %v7000_v14  ;;  %v4250_v3 = vsel %vm900_vm4, %v7000_v14, 0.0  ;;  %v4294_v8 = vsel %vm900_vm4, %v4265_v13, 0.0 }
 0x6b3   :  { %v4298_v17 = vsel %vm900_vm4, %v4236_v37, 0.0  ;;  %v4251_v4 = vadd.f32 %v4250_v3, %v4249_v33  ;;  %v4282_v48 = vadd.f32 %v4281_v19, %v4280_v63  ;;  %v4295_v11 = vadd.f32 %v4294_v8, %v4293_v43 }
 0x6b4   :  { %4299 = vadd.xlane.f32.xlu0 %v4298_v17  ;;  %v4296_v53 = vsel %vm900_vm4, %v4267_v12, 0.0 }
 0x6b5   :  { %v4301_v38 = vsel %vm900_vm4, %v4251_v4, 0.0  ;;  %v4306_v60 = vsel %vm900_vm4, %v4282_v48, 0.0  ;;  %v4297_v24 = vadd.f32 %v4296_v53, %v4295_v11 }
 0x6b6   :  { %4302 = vadd.xlane.f32.xlu1 %v4301_v38 }
 0x6b7   :  { %v4309_v5 = vsel %vm900_vm4, %v4297_v24, 0.0 }
 0x6b8   :  { %4307 = vadd.xlane.f32.xlu0 %v4306_v60 }
 0x6bc   :  { %4310 = vadd.xlane.f32.xlu0 %v4309_v5 }
 0x741   :  { %v4300_v47 = vpop.xlane.xlu0 %4299 }
 0x742   :  { %v4304_v45 = vmul.f32 0.0078125, %v4300_v47 }
 0x743   :  { %v4303_v35 = vpop.xlane.xlu1 %4302 }
 0x744   :  { %v4314_v22 = vmul.f32 %v4304_v45, %v4304_v45  ;;  %v4305_v0 = vmul.f32 0.0078125, %v4303_v35 }
 0x745   :  { %v4308_v6 = vpop.xlane.xlu0 %4307 }
 0x746   :  { %v4312_v61 = vmul.f32 0.0078125, %v4308_v6  ;;  %v4315_v62 = vmul.f32 %v4305_v0, %v4305_v0 }
 0x748   :  { %v4316_v34 = vsub.f32 %v4312_v61, %v4314_v22 }
 0x749   :  { %v4311_v31 = vpop.xlane.xlu0 %4310 }
 0x74a   :  { %v4318_v25 = vmax.f32 %v4316_v34, 0.0  ;;  %v4313_v39 = vmul.f32 0.0078125, %v4311_v31 }
 0x74c   :  { %v4322_v49 = vadd.f32 1e-05, %v4318_v25  ;;  %v4317_v29 = vsub.f32 %v4313_v39, %v4315_v62 }
 0x74e   :  { %5678 = vrsqrt.f32 %v4322_v49  ;;  %v4319_v16 = vmax.f32 %v4317_v29, 0.0 }
 0x750   :  { %v4323_v30 = vadd.f32 1e-05, %v4319_v16 }
 0x752   :  { %5680 = vrsqrt.f32 %v4323_v30 }
 0x758   :  { %v5679_v46 = vpop.eup %5678 }
 0x759   :  { %v4326_v27 = vmul.f32 %v5679_v46, %v4320_v23 }
 0x75b   :  { %4336 = vperm.xlu1 %5509, %v4326_v27   ;;  %v4330_v2 = vmul.f32 %v4326_v27, %v4304_v45 }
 0x75c   :  { %v5681_v20 = vpop.eup %5680 }
 0x75d   :  { %v4332_v52 = vsub.f32 %v4328_v41, %v4330_v2  ;;  %v4327_v18 = vmul.f32 %v5681_v20, %v4321_v51 }
 0x75f   :  { %4350 = vperm.xlu1 %5509, %v4332_v52   ;;  %4341 = vperm.xlu0 %5510, %v4327_v18   ;;  %v4331_v1 = vmul.f32 %v4327_v18, %v4305_v0 }
 0x761   :  { %v4333_v55 = vsub.f32 %v4329_v32, %v4331_v1 }
 0x763   :  { %4355 = vperm.xlu1 %5509, %v4333_v55  }
 0x7da   :  { %v4337_v56 = vpop.permute.xlu1 %4336 }
 0x7db   :  { %v4344_v21 = vmul.f32 %v4337_v56, %v6980_v50  ;;  %v4346_v58 = vmul.f32 %v4337_v56, %v6990_v7 }
 0x7de   :  { %v4351_v44 = vpop.permute.xlu1 %4350  ;;  %v4342_v10 = vpop.permute.xlu0 %4341 }
 0x7df   :  { %v4358_v26 = vadd.f32 %v4351_v44, %v4344_v21  ;;  %v4360_v57 = vadd.f32 %v4351_v44, %v4346_v58  ;;  %v4345_v36 = vmul.f32 %v4342_v10, %v6988_v40  ;;  %v4347_v50 = vmul.f32 %v4342_v10, %v7000_v14 }
 0x7e1   :  { %4362 = vst.msk [vmem:[%s7058_s10] sm:$0xff] %vm900_vm4, %v4358_v26  ;;  %4364 = vst.msk [vmem:[%s7058_s10 + $0x10] sm:$0xff] %vm900_vm4, %v4360_v57 }
 0x7e2   :  { %v4356_v13 = vpop.permute.xlu1 %4355 }
 0x7e3   :  { %v4359_v7 = vadd.f32 %v4356_v13, %v4345_v36  ;;  %v4361_v54 = vadd.f32 %v4356_v13, %v4347_v50 }
 0x7e5   :  { %4363 = vst.msk [vmem:[%s7058_s10 + $0x8] sm:$0xff] %vm900_vm4, %v4359_v7  ;;  %4365 = vst.msk [vmem:[%s7058_s10 + $0x18] sm:$0xff] %vm900_vm4, %v4361_v54 }

</bundles_post_ra>
